<compile_context>
chip_gen: v6e
topology: v6e:2x2x1
jax: 0.10.0
libtpu: 0.0.40
codegen_flags: <defaults>
</compile_context>

<pallas_src>
import functools

import jax
import jax.numpy as jnp
from jax.experimental import pallas as pl
from jax.experimental.pallas import tpu as pltpu

LN_EPS = 1e-5
_INV_SQRT2 = 0.7071067811865476
_VMEM_LIMIT = 64 * 1024 * 1024


# ----------------------------------------------------------------------------
# Tiling helpers (all static Python ints).
# ----------------------------------------------------------------------------
def _choose_row_block(n):
    for tr in (1024, 512, 256, 128, 64, 32, 16, 8):
        if n % tr == 0:
            return tr
    return n


def _choose_head_block(h, dh, s, budget=4 * 1024 * 1024):
    # Largest head block whose (HB, S, S) f32 logits tile fits the budget,
    # subject to HB | H and HB*Dh lane-aligned (multiple of 128) unless HB==H.
    valid = [hb for hb in range(1, h + 1)
             if h % hb == 0 and (hb == h or (hb * dh) % 128 == 0)]
    fitting = [hb for hb in valid if hb * s * s * 4 <= budget]
    return max(fitting) if fitting else min(valid)


def _choose_pair_qblock(s, h, budget=2 * 1024 * 1024):
    for tq in (256, 128, 64, 32, 16, 8):
        if s % tq == 0 and h * tq * s * 4 <= budget:
            return tq
    for tq in (8, 16, 32, 64, 128, 256):
        if s % tq == 0:
            return tq
    return s


# ----------------------------------------------------------------------------
# Pallas kernel: row-tiled LayerNorm over the last dim, times a per-row mask.
# Used for: emb_layer_norm (*(1 - padding_mask)) and final_layer_norm (mask=1).
# ----------------------------------------------------------------------------
def _ln_mask_kernel(x_ref, g_ref, b_ref, m_ref, o_ref):
    x = x_ref[...].astype(jnp.float32)                          # (TR, D)
    mu = jnp.mean(x, axis=-1, keepdims=True)
    var = jnp.mean(jnp.square(x - mu), axis=-1, keepdims=True)
    y = (x - mu) * jax.lax.rsqrt(var + LN_EPS) * g_ref[...] + b_ref[...]
    o_ref[...] = (y * m_ref[...]).astype(o_ref.dtype)


def layernorm_masked(x2d, gamma, beta, mask_col):
    n, d = x2d.shape
    tr = _choose_row_block(n)
    return pl.pallas_call(
        _ln_mask_kernel,
        out_shape=jax.ShapeDtypeStruct((n, d), x2d.dtype),
        grid=(n // tr,),
        in_specs=[pl.BlockSpec((tr, d), lambda i: (i, 0)),
                  pl.BlockSpec((1, d), lambda i: (0, 0)),
                  pl.BlockSpec((1, d), lambda i: (0, 0)),
                  pl.BlockSpec((tr, 1), lambda i: (i, 0))],
        out_specs=pl.BlockSpec((tr, d), lambda i: (i, 0)),
        compiler_params=pltpu.CompilerParams(
            dimension_semantics=("parallel",)),
    )(x2d, gamma.reshape(1, d), beta.reshape(1, d), mask_col)


# ----------------------------------------------------------------------------
# Pallas kernel: one pre-LN transformer encoder layer, gridded over
# (batch, head_block).  Per head block:
#   Q/K/V projection (bf16 MXU) -> logits = QK^T*scale + bias (emitted as the
#   pair repr for the next layer) -> softmax -> P·V -> accumulate through the
#   head block's slice of W_out into an (S, E) f32 scratch.
# On the last head block: out bias + residual + pre-LN FFN (exact gelu).
# ----------------------------------------------------------------------------
def _encoder_layer_kernel(x_ref, bias_ref,
                          ln1_g_ref, ln1_b_ref, w_qkv_ref, b_qkv_ref,
                          w_out_ref, b_out_ref, ln2_g_ref, ln2_b_ref,
                          w_fc1_ref, b_fc1_ref, w_fc2_ref, b_fc2_ref,
                          x_out_ref, logits_out_ref,
                          xn_sc, acc_sc,
                          *, num_head_blocks, head_block, head_dim):
    hb = pl.program_id(1)
    s = x_ref.shape[1]
    hbd = head_block * head_dim
    scaling = head_dim ** -0.5

    # pre-LN of the attention block: computed once per batch element
    @pl.when(hb == 0)
    def _():
        x = x_ref[0].astype(jnp.float32)                        # (S, E)
        mu = jnp.mean(x, axis=-1, keepdims=True)
        var = jnp.mean(jnp.square(x - mu), axis=-1, keepdims=True)
        xn = (x - mu) * jax.lax.rsqrt(var + LN_EPS) * ln1_g_ref[...] + ln1_b_ref[...]
        xn_sc[...] = xn.astype(jnp.bfloat16)
        acc_sc[...] = jnp.zeros_like(acc_sc)

    xn_bf = xn_sc[...]                                          # (S, E) bf16

    # Q / K / V projection for this head block (bf16 MXU, f32 accumulation)
    q = jnp.dot(xn_bf, w_qkv_ref[0], preferred_element_type=jnp.float32)
    q = (q + b_qkv_ref[0]) * scaling
    k = jnp.dot(xn_bf, w_qkv_ref[1], preferred_element_type=jnp.float32)
    k = k + b_qkv_ref[1]
    v = jnp.dot(xn_bf, w_qkv_ref[2], preferred_element_type=jnp.float32)
    v = v + b_qkv_ref[2]

    qh = jnp.transpose(q.astype(jnp.bfloat16).reshape(s, head_block, head_dim),
                       (1, 0, 2))                               # (HB, S, Dh)
    kh = jnp.transpose(k.astype(jnp.bfloat16).reshape(s, head_block, head_dim),
                       (1, 0, 2))
    vh = jnp.transpose(v.astype(jnp.bfloat16).reshape(s, head_block, head_dim),
                       (1, 0, 2))

    # attention logits (= pair repr passed to the next layer)
    logits = jnp.einsum('hqd,hkd->hqk', qh, kh,
                        preferred_element_type=jnp.float32)     # (HB, S, S)
    logits = logits + bias_ref[0]
    logits_out_ref[0] = logits

    # softmax in f32, guarded against fully-masked (all -inf) rows
    m = jnp.max(logits, axis=-1, keepdims=True)
    m = jnp.maximum(m, -1e30)
    e = jnp.exp(logits - m)
    denom = jnp.sum(e, axis=-1, keepdims=True)
    denom = jnp.where(denom > 0.0, denom, 1.0)
    p = e * pl.reciprocal(denom, approx=True)

    o = jnp.einsum('hqk,hkd->hqd', p.astype(jnp.bfloat16), vh,
                   preferred_element_type=jnp.float32)          # (HB, S, Dh)
    o2 = jnp.transpose(o, (1, 0, 2)).reshape(s, hbd)            # (S, HB*Dh)

    # accumulate through this head block's row slice of W_out
    acc_sc[...] += jnp.dot(o2.astype(jnp.bfloat16), w_out_ref[...],
                           preferred_element_type=jnp.float32)

    # residual + FFN, once all head blocks have been accumulated
    @pl.when(hb == num_head_blocks - 1)
    def _():
        x = x_ref[0].astype(jnp.float32)
        x1 = x + acc_sc[...] + b_out_ref[...]
        mu2 = jnp.mean(x1, axis=-1, keepdims=True)
        var2 = jnp.mean(jnp.square(x1 - mu2), axis=-1, keepdims=True)
        xn2 = (x1 - mu2) * jax.lax.rsqrt(var2 + LN_EPS) * ln2_g_ref[...] + ln2_b_ref[...]
        hdn = jnp.dot(xn2.astype(jnp.bfloat16), w_fc1_ref[...],
                      preferred_element_type=jnp.float32) + b_fc1_ref[...]
        hdn = 0.5 * hdn * (1.0 + jax.lax.erf(hdn * _INV_SQRT2))  # exact gelu
        out = jnp.dot(hdn.astype(jnp.bfloat16), w_fc2_ref[...],
                      preferred_element_type=jnp.float32) + b_fc2_ref[...]
        x_out_ref[0] = (x1 + out).astype(x_out_ref.dtype)


def encoder_layer(x, attn_bias, lp, num_heads, head_block):
    b, s, e = x.shape
    h = num_heads
    dh = e // h
    hbd = head_block * dh
    nhb = h // head_block
    f = lp['w_fc1'].shape[1]
    bf = jnp.bfloat16

    kernel = functools.partial(_encoder_layer_kernel,
                               num_head_blocks=nhb, head_block=head_block,
                               head_dim=dh)
    const2 = lambda i, j: (0, 0)

    return pl.pallas_call(
        kernel,
        out_shape=(jax.ShapeDtypeStruct((b, s, e), jnp.float32),
                   jax.ShapeDtypeStruct((b, h, s, s), jnp.float32)),
        grid=(b, nhb),
        in_specs=[
            pl.BlockSpec((1, s, e), lambda i, j: (i, 0, 0)),               # x
            pl.BlockSpec((1, head_block, s, s), lambda i, j: (i, j, 0, 0)),  # bias
            pl.BlockSpec((1, e), const2),                                  # ln1 gamma
            pl.BlockSpec((1, e), const2),                                  # ln1 beta
            pl.BlockSpec((3, e, hbd), lambda i, j: (0, 0, j)),             # w_qkv
            pl.BlockSpec((3, hbd), lambda i, j: (0, j)),                   # b_qkv
            pl.BlockSpec((hbd, e), lambda i, j: (j, 0)),                   # w_out
            pl.BlockSpec((1, e), const2),                                  # b_out
            pl.BlockSpec((1, e), const2),                                  # ln2 gamma
            pl.BlockSpec((1, e), const2),                                  # ln2 beta
            pl.BlockSpec((e, f), const2),                                  # w_fc1
            pl.BlockSpec((1, f), const2),                                  # b_fc1
            pl.BlockSpec((f, e), const2),                                  # w_fc2
            pl.BlockSpec((1, e), const2),                                  # b_fc2
        ],
        out_specs=(pl.BlockSpec((1, s, e), lambda i, j: (i, 0, 0)),
                   pl.BlockSpec((1, head_block, s, s), lambda i, j: (i, j, 0, 0))),
        scratch_shapes=[pltpu.VMEM((s, e), jnp.bfloat16),   # LN1(x), bf16
                        pltpu.VMEM((s, e), jnp.float32)],   # attn-out accumulator
        compiler_params=pltpu.CompilerParams(
            dimension_semantics=("parallel", "arbitrary"),
            vmem_limit_bytes=_VMEM_LIMIT),
    )(x, attn_bias,
      lp['ln1_g'].reshape(1, e), lp['ln1_b'].reshape(1, e),
      lp['w_qkv'].astype(bf), lp['b_qkv'],
      lp['w_out'].astype(bf), lp['b_out'].reshape(1, e),
      lp['ln2_g'].reshape(1, e), lp['ln2_b'].reshape(1, e),
      lp['w_fc1'].astype(bf), lp['b_fc1'].reshape(1, f),
      lp['w_fc2'].astype(bf), lp['b_fc2'].reshape(1, e))


# ----------------------------------------------------------------------------
# Pallas kernel: fused pair-repr epilogue.
#   delta = final_logits - input_bias, padded key cols -> 0,
#   per-position norm-loss over heads, head-axis LayerNorm,
#   and the (0,2,3,1) permute, all in one pass over (1, H, TQ, S) tiles.
# All head-axis reductions are done while H is still a *major* axis (cheap
# VALU adds over H slices); only the two returned tensors are relaid out to
# the lane-minor (TQ, S, H) layout immediately before the store.
# ----------------------------------------------------------------------------
def _hts_to_tsh(x):
    # (H, TQ, S) -> (TQ, S, H): major-dims swap then a minor 2-D transpose
    # (both well-supported Mosaic relayout patterns).
    return jnp.swapaxes(jnp.swapaxes(x, 0, 1), 1, 2)


def _pair_epilogue_kernel(bias_ref, inm_ref, pad_ref, g_ref, b_ref,
                          attn_out_ref, delta_out_ref, err_ref):
    bias = bias_ref[0]                                          # (H, TQ, S)
    inm = inm_ref[0]                                            # (H, TQ, S)
    padk = pad_ref[0]                                           # (1, S), 1.0 at pad keys
    h = bias.shape[0]

    # delta pair repr; padded key columns -> 0 (matches fill_attn_mask(fill=0))
    delta = jnp.where(padk > 0.5, 0.0, bias - inm)              # (H, TQ, S)

    # norm loss over heads, computed BEFORE the head LayerNorm (like PyTorch).
    # Head axis is major here -> reduction is H-1 elementwise adds (VALU).
    nrm = jnp.sqrt(jnp.sum(delta * delta, axis=0) + 1e-10)      # (TQ, S)
    err_ref[0] = jnp.maximum(jnp.abs(nrm - float(h) ** 0.5) - 1.0, 0.0)

    # final_head_layer_norm over the heads axis (still major)
    mu = jnp.mean(delta, axis=0, keepdims=True)                 # (1, TQ, S)
    var = jnp.mean(jnp.square(delta - mu), axis=0, keepdims=True)
    dln = (delta - mu) * jax.lax.rsqrt(var + LN_EPS) * g_ref[...] + b_ref[...]

    # relayout to the module's (q, k, head) output layout only at store time
    attn_out_ref[0] = _hts_to_tsh(bias).astype(attn_out_ref.dtype)
    delta_out_ref[0] = _hts_to_tsh(dln).astype(delta_out_ref.dtype)


def pair_epilogue(bias, input_mask, pad_key_row, hln_g, hln_b):
    b, h, s, _ = bias.shape
    tq = _choose_pair_qblock(s, h)
    return pl.pallas_call(
        _pair_epilogue_kernel,
        out_shape=(jax.ShapeDtypeStruct((b, s, s, h), jnp.float32),
                   jax.ShapeDtypeStruct((b, s, s, h), jnp.float32),
                   jax.ShapeDtypeStruct((b, s, s), jnp.float32)),
        grid=(b, s // tq),
        in_specs=[pl.BlockSpec((1, h, tq, s), lambda i, j: (i, 0, j, 0)),
                  pl.BlockSpec((1, h, tq, s), lambda i, j: (i, 0, j, 0)),
                  pl.BlockSpec((1, 1, s), lambda i, j: (i, 0, 0)),
                  pl.BlockSpec((h, 1, 1), lambda i, j: (0, 0, 0)),
                  pl.BlockSpec((h, 1, 1), lambda i, j: (0, 0, 0))],
        out_specs=(pl.BlockSpec((1, tq, s, h), lambda i, j: (i, j, 0, 0)),
                   pl.BlockSpec((1, tq, s, h), lambda i, j: (i, j, 0, 0)),
                   pl.BlockSpec((1, tq, s), lambda i, j: (i, j, 0))),
        compiler_params=pltpu.CompilerParams(
            dimension_semantics=("parallel", "parallel"),
            vmem_limit_bytes=_VMEM_LIMIT),
    )(bias, input_mask, pad_key_row,
      hln_g.reshape(h, 1, 1), hln_b.reshape(h, 1, 1))


# ----------------------------------------------------------------------------
# Full module forward (glue in plain JAX, hot path in the Pallas kernels).
# ----------------------------------------------------------------------------
def transformer_encoder_with_pair(params, emb, attn_mask, padding_mask,
                                  num_heads):
    bsz, seq_len, embed_dim = emb.shape
    h = num_heads
    dh = embed_dim // h

    pad_f = padding_mask.astype(jnp.float32)                    # (B, S), 1 at pad
    token_mask = 1.0 - pad_f

    # emb layer norm, then zero out padded tokens:  x = LN(emb) * (1 - pad)
    x = layernorm_masked(emb.reshape(bsz * seq_len, embed_dim),
                         params['emb_ln_g'], params['emb_ln_b'],
                         token_mask.reshape(bsz * seq_len, 1))
    x = x.reshape(bsz, seq_len, embed_dim)

    input_attn_mask = attn_mask.reshape(bsz, h, seq_len, seq_len)
    pad_key = padding_mask.astype(bool)[:, None, None, :]
    bias = jnp.where(pad_key, float('-inf'), input_attn_mask)

    # encoder layers: x and pair bias (pre-softmax logits) threaded through
    head_block = _choose_head_block(h, dh, seq_len)
    for lp in params['layers']:
        x, bias = encoder_layer(x, bias, lp, h, head_block)

    def norm_loss(v, eps=1e-10, tolerance=1.0):
        max_norm = v.shape[-1] ** 0.5
        nrm = jnp.sqrt(jnp.sum(jnp.square(v.astype(jnp.float32)), axis=-1) + eps)
        return jax.nn.relu(jnp.abs(nrm - max_norm) - tolerance)

    def masked_mean(mask, value, axis, eps=1e-10):
        return jnp.mean(jnp.sum(mask * value, axis=axis)
                        / (eps + jnp.sum(mask, axis=axis)))

    x_norm = masked_mean(token_mask, norm_loss(x), axis=-1)

    # final layer norm
    x = layernorm_masked(x.reshape(bsz * seq_len, embed_dim),
                         params['final_ln_g'], params['final_ln_b'],
                         jnp.ones((bsz * seq_len, 1), jnp.float32))
    x = x.reshape(bsz, seq_len, embed_dim)

    # fused epilogue: delta pair repr, pad zeroing, head LN, (0,2,3,1) permute
    attn_mask_out, delta_pair_repr, pair_err = pair_epilogue(
        bias, input_attn_mask, pad_f.reshape(bsz, 1, seq_len),
        params['head_ln_g'], params['head_ln_b'])

    pair_mask = token_mask[:, :, None] * token_mask[:, None, :]
    delta_pair_repr_norm = masked_mean(pair_mask, pair_err, axis=(-1, -2))

    return x, attn_mask_out, delta_pair_repr, x_norm, delta_pair_repr_norm


# ----------------------------------------------------------------------------
# Deterministic parameter init (shapes implied by the module's __init__).
# ----------------------------------------------------------------------------
def init_params(key, n_layers, embed_dim, num_heads, ffn_dim):
    keys = iter(jax.random.split(key, 6 + 12 * n_layers))

    def nrm(shape, scale=0.1):
        return scale * jax.random.normal(next(keys), shape, jnp.float32)

    e, h, f = embed_dim, num_heads, ffn_dim
    params = {
        'emb_ln_g': 1.0 + nrm((e,)), 'emb_ln_b': nrm((e,)),
        'final_ln_g': 1.0 + nrm((e,)), 'final_ln_b': nrm((e,)),
        'head_ln_g': 1.0 + nrm((h,)), 'head_ln_b': nrm((h,)),
        'layers': [],
    }
    for _ in range(n_layers):
        params['layers'].append({
            'ln1_g': 1.0 + nrm((e,)), 'ln1_b': nrm((e,)),
            'w_qkv': nrm((3, e, e)), 'b_qkv': nrm((3, e)),
            'w_out': nrm((e, e)),    'b_out': nrm((e,)),
            'ln2_g': 1.0 + nrm((e,)), 'ln2_b': nrm((e,)),
            'w_fc1': nrm((e, f)),    'b_fc1': nrm((f,)),
            'w_fc2': nrm((f, e)),    'b_fc2': nrm((e,)),
        })
    return params


if __name__ == "__main__":
    B, S, E, H, FFN, L = 2, 8, 32, 4, 64, 2

    key = jax.random.PRNGKey(0)
    kp, ke, ka = jax.random.split(key, 3)
    params = init_params(kp, L, E, H, FFN)

    emb = jax.random.normal(ke, (B, S, E), jnp.float32)
    attn_mask = 0.1 * jax.random.normal(ka, (B * H, S, S), jnp.float32)
    padding_mask = jnp.array([[0, 0, 0, 0, 0, 0, 0, 0],
                              [0, 0, 0, 0, 0, 0, 1, 1]], dtype=jnp.bool_)

    fwd = jax.jit(functools.partial(transformer_encoder_with_pair,
                                    num_heads=H))
    outs = jax.block_until_ready(fwd(params, emb, attn_mask, padding_mask))

    x, attn_out, delta_pair, x_norm, delta_norm = outs
    assert x.shape == (B, S, E)
    assert attn_out.shape == (B, S, S, H)
    assert delta_pair.shape == (B, S, S, H)
    assert x_norm.shape == () and delta_norm.shape == ()
    assert bool(jnp.all(jnp.isfinite(x)))
    assert bool(jnp.all(jnp.isfinite(delta_pair)))

    print("KERNEL_OK")
</pallas_src>

<mosaic_0001>
module attributes {stable_mosaic.version = 11 : i64} {
  func.func @_ln_mask_kernel(%arg0: i32, %arg1: memref<16x32xf32, #tpu.memory_space<vmem>>, %arg2: memref<1x32xf32, #tpu.memory_space<vmem>>, %arg3: memref<1x32xf32, #tpu.memory_space<vmem>>, %arg4: memref<16x1xf32, #tpu.memory_space<vmem>>, %arg5: memref<16x32xf32, #tpu.memory_space<vmem>>) attributes {dimension_semantics = [#tpu.dimension_semantics<parallel>], iteration_bounds = array<i64: 1>, scalar_prefetch = 0 : i64, scratch_operands = 0 : i64, tpu.core_type = #tpu.core_type<tc>, window_params = [{transform_indices = @transform_0, window_bounds = array<i64: 16, 32>}, {pipeline_mode = #tpu.pipeline_mode<synchronous>, transform_indices = @transform_1, window_bounds = array<i64: 1, 32>}, {pipeline_mode = #tpu.pipeline_mode<synchronous>, transform_indices = @transform_2, window_bounds = array<i64: 1, 32>}, {transform_indices = @transform_3, window_bounds = array<i64: 16, 1>}, {transform_indices = @transform_4, window_bounds = array<i64: 16, 32>}]} {
    %c0 = arith.constant 0 : index
    %c0_0 = arith.constant 0 : index
    %0 = vector.load %arg1[%c0, %c0_0] : memref<16x32xf32, #tpu.memory_space<vmem>>, vector<16x32xf32>
    %cst = arith.constant dense<0.000000e+00> : vector<16xf32>
    %1 = vector.multi_reduction <add>, %0, %cst [1] : vector<16x32xf32> to vector<16xf32>
    %2 = vector.shape_cast %1 : vector<16xf32> to vector<16x1xf32>
    %cst_1 = arith.constant 3.200000e+01 : f32
    %3 = vector.broadcast %cst_1 : f32 to vector<16x1xf32>
    %4 = arith.divf %2, %3 : vector<16x1xf32>
    %5 = vector.broadcast %4 : vector<16x1xf32> to vector<16x32xf32>
    %6 = arith.subf %0, %5 : vector<16x32xf32>
    %7 = arith.mulf %6, %6 : vector<16x32xf32>
    %cst_2 = arith.constant dense<0.000000e+00> : vector<16xf32>
    %8 = vector.multi_reduction <add>, %7, %cst_2 [1] : vector<16x32xf32> to vector<16xf32>
    %9 = vector.shape_cast %8 : vector<16xf32> to vector<16x1xf32>
    %cst_3 = arith.constant 3.200000e+01 : f32
    %10 = vector.broadcast %cst_3 : f32 to vector<16x1xf32>
    %11 = arith.divf %9, %10 : vector<16x1xf32>
    %12 = vector.broadcast %4 : vector<16x1xf32> to vector<16x32xf32>
    %13 = arith.subf %0, %12 : vector<16x32xf32>
    %cst_4 = arith.constant 9.99999974E-6 : f32
    %14 = vector.broadcast %cst_4 : f32 to vector<16x1xf32>
    %15 = arith.addf %11, %14 : vector<16x1xf32>
    %16 = math.rsqrt %15 : vector<16x1xf32>
    %17 = vector.broadcast %16 : vector<16x1xf32> to vector<16x32xf32>
    %18 = arith.mulf %13, %17 : vector<16x32xf32>
    %c0_5 = arith.constant 0 : index
    %c0_6 = arith.constant 0 : index
    %19 = vector.load %arg2[%c0_5, %c0_6] : memref<1x32xf32, #tpu.memory_space<vmem>>, vector<1x32xf32>
    %20 = vector.broadcast %19 : vector<1x32xf32> to vector<16x32xf32>
    %21 = arith.mulf %18, %20 : vector<16x32xf32>
    %c0_7 = arith.constant 0 : index
    %c0_8 = arith.constant 0 : index
    %22 = vector.load %arg3[%c0_7, %c0_8] : memref<1x32xf32, #tpu.memory_space<vmem>>, vector<1x32xf32>
    %23 = vector.broadcast %22 : vector<1x32xf32> to vector<16x32xf32>
    %24 = arith.addf %21, %23 : vector<16x32xf32>
    %c0_9 = arith.constant 0 : index
    %c0_10 = arith.constant 0 : index
    %25 = vector.load %arg4[%c0_9, %c0_10] : memref<16x1xf32, #tpu.memory_space<vmem>>, vector<16x1xf32>
    %26 = vector.broadcast %25 : vector<16x1xf32> to vector<16x32xf32>
    %27 = arith.mulf %24, %26 : vector<16x32xf32>
    %c0_11 = arith.constant 0 : index
    %c0_12 = arith.constant 0 : index
    %28 = vector.load %arg5[%c0_11, %c0_12] : memref<16x32xf32, #tpu.memory_space<vmem>>, vector<16x32xf32>
    tpu.vector_store %arg5[%c0_11, %c0_12], %27 {strides = array<i32>} : memref<16x32xf32, #tpu.memory_space<vmem>>, vector<16x32xf32>,
    return
  }
  func.func @transform_0(%arg0: i32) -> (i32, i32) {
    %c0_i32 = arith.constant 0 : i32
    %c0_i32_0 = arith.constant 0 : i32
    return %arg0, %c0_i32 : i32, i32
  }
  func.func @transform_1(%arg0: i32) -> (i32, i32) {
    %c0_i32 = arith.constant 0 : i32
    %c0_i32_0 = arith.constant 0 : i32
    %c0_i32_1 = arith.constant 0 : i32
    return %c0_i32, %c0_i32_0 : i32, i32
  }
  func.func @transform_2(%arg0: i32) -> (i32, i32) {
    %c0_i32 = arith.constant 0 : i32
    %c0_i32_0 = arith.constant 0 : i32
    %c0_i32_1 = arith.constant 0 : i32
    return %c0_i32, %c0_i32_0 : i32, i32
  }
  func.func @transform_3(%arg0: i32) -> (i32, i32) {
    %c0_i32 = arith.constant 0 : i32
    %c0_i32_0 = arith.constant 0 : i32
    return %arg0, %c0_i32 : i32, i32
  }
  func.func @transform_4(%arg0: i32) -> (i32, i32) {
    %c0_i32 = arith.constant 0 : i32
    %c0_i32_0 = arith.constant 0 : i32
    return %arg0, %c0_i32 : i32, i32
  }
}

module attributes {stable_mosaic.version = 11 : i64} {
  func.func @_pair_epilogue_kernel(%arg0: i32, %arg1: i32, %arg2: memref<1x4x8x8xf32, #tpu.memory_space<vmem>>, %arg3: memref<1x4x8x8xf32, #tpu.memory_space<vmem>>, %arg4: memref<1x1x8xf32, #tpu.memory_space<vmem>>, %arg5: memref<4x1x1xf32, #tpu.memory_space<vmem>>, %arg6: memref<4x1x1xf32, #tpu.memory_space<vmem>>, %arg7: memref<1x8x8x4xf32, #tpu.memory_space<vmem>>, %arg8: memref<1x8x8x4xf32, #tpu.memory_space<vmem>>, %arg9: memref<1x8x8xf32, #tpu.memory_space<vmem>>) attributes {dimension_semantics = [#tpu.dimension_semantics<parallel>, #tpu.dimension_semantics<parallel>], iteration_bounds = array<i64: 2, 1>, scalar_prefetch = 0 : i64, scratch_operands = 0 : i64, tpu.core_type = #tpu.core_type<tc>, window_params = [{transform_indices = @transform_0, window_bounds = array<i64: 1, 4, 8, 8>}, {transform_indices = @transform_1, window_bounds = array<i64: 1, 4, 8, 8>}, {transform_indices = @transform_2, window_bounds = array<i64: 1, 1, 8>}, {pipeline_mode = #tpu.pipeline_mode<synchronous>, transform_indices = @transform_3, window_bounds = array<i64: 4, 1, 1>}, {pipeline_mode = #tpu.pipeline_mode<synchronous>, transform_indices = @transform_4, window_bounds = array<i64: 4, 1, 1>}, {transform_indices = @transform_5, window_bounds = array<i64: 1, 8, 8, 4>}, {transform_indices = @transform_6, window_bounds = array<i64: 1, 8, 8, 4>}, {transform_indices = @transform_7, window_bounds = array<i64: 1, 8, 8>}]} {
    %c0 = arith.constant 0 : index
    %c0_0 = arith.constant 0 : index
    %c0_1 = arith.constant 0 : index
    %c0_2 = arith.constant 0 : index
    %0 = vector.load %arg2[%c0, %c0_0, %c0_1, %c0_2] : memref<1x4x8x8xf32, #tpu.memory_space<vmem>>, vector<1x4x8x8xf32>
    %1 = vector.shape_cast %0 : vector<1x4x8x8xf32> to vector<4x8x8xf32>
    %c0_3 = arith.constant 0 : index
    %c0_4 = arith.constant 0 : index
    %c0_5 = arith.constant 0 : index
    %c0_6 = arith.constant 0 : index
    %2 = vector.load %arg3[%c0_3, %c0_4, %c0_5, %c0_6] : memref<1x4x8x8xf32, #tpu.memory_space<vmem>>, vector<1x4x8x8xf32>
    %3 = vector.shape_cast %2 : vector<1x4x8x8xf32> to vector<4x8x8xf32>
    %c0_7 = arith.constant 0 : index
    %c0_8 = arith.constant 0 : index
    %c0_9 = arith.constant 0 : index
    %4 = vector.load %arg4[%c0_7, %c0_8, %c0_9] : memref<1x1x8xf32, #tpu.memory_space<vmem>>, vector<1x1x8xf32>
    %5 = vector.shape_cast %4 : vector<1x1x8xf32> to vector<1x8xf32>
    %cst = arith.constant 5.000000e-01 : f32
    %6 = vector.broadcast %cst : f32 to vector<1x8xf32>
    %7 = arith.cmpf ogt, %5, %6 : vector<1x8xf32>
    %8 = arith.subf %1, %3 : vector<4x8x8xf32>
    %cst_10 = arith.constant 0.000000e+00 : f32
    %9 = vector.shape_cast %7 : vector<1x8xi1> to vector<1x1x8xi1>
    %10 = vector.broadcast %9 : vector<1x1x8xi1> to vector<4x8x8xi1>
    %11 = vector.broadcast %cst_10 : f32 to vector<4x8x8xf32>
    %12 = arith.select %10, %11, %8 : vector<4x8x8xi1>, vector<4x8x8xf32>
    %13 = arith.mulf %12, %12 : vector<4x8x8xf32>
    %cst_11 = arith.constant dense<0.000000e+00> : vector<8x8xf32>
    %14 = vector.multi_reduction <add>, %13, %cst_11 [0] : vector<4x8x8xf32> to vector<8x8xf32>
    %cst_12 = arith.constant 1.000000e-10 : f32
    %15 = vector.broadcast %cst_12 : f32 to vector<8x8xf32>
    %16 = arith.addf %14, %15 : vector<8x8xf32>
    %17 = math.sqrt %16 : vector<8x8xf32>
    %cst_13 = arith.constant 2.000000e+00 : f32
    %18 = vector.broadcast %cst_13 : f32 to vector<8x8xf32>
    %19 = arith.subf %17, %18 : vector<8x8xf32>
    %20 = math.absf %19 : vector<8x8xf32>
    %cst_14 = arith.constant 1.000000e+00 : f32
    %21 = vector.broadcast %cst_14 : f32 to vector<8x8xf32>
    %22 = arith.subf %20, %21 : vector<8x8xf32>
    %cst_15 = arith.constant 0.000000e+00 : f32
    %23 = vector.broadcast %cst_15 : f32 to vector<8x8xf32>
    %24 = arith.maximumf %22, %23 : vector<8x8xf32>
    %c0_16 = arith.constant 0 : index
    %c0_17 = arith.constant 0 : index
    %c0_18 = arith.constant 0 : index
    %25 = vector.load %arg9[%c0_16, %c0_17, %c0_18] : memref<1x8x8xf32, #tpu.memory_space<vmem>>, vector<1x8x8xf32>
    %26 = vector.shape_cast %25 : vector<1x8x8xf32> to vector<8x8xf32>
    %27 = vector.shape_cast %24 : vector<8x8xf32> to vector<1x8x8xf32>
    tpu.vector_store %arg9[%c0_16, %c0_17, %c0_18], %27 {strides = array<i32>} : memref<1x8x8xf32, #tpu.memory_space<vmem>>, vector<1x8x8xf32>,
    %cst_19 = arith.constant dense<0.000000e+00> : vector<8x8xf32>
    %28 = vector.multi_reduction <add>, %12, %cst_19 [0] : vector<4x8x8xf32> to vector<8x8xf32>
    %29 = vector.shape_cast %28 : vector<8x8xf32> to vector<1x8x8xf32>
    %cst_20 = arith.constant 4.000000e+00 : f32
    %30 = vector.broadcast %cst_20 : f32 to vector<1x8x8xf32>
    %31 = arith.divf %29, %30 : vector<1x8x8xf32>
    %32 = vector.broadcast %31 : vector<1x8x8xf32> to vector<4x8x8xf32>
    %33 = arith.subf %12, %32 : vector<4x8x8xf32>
    %34 = arith.mulf %33, %33 : vector<4x8x8xf32>
    %cst_21 = arith.constant dense<0.000000e+00> : vector<8x8xf32>
    %35 = vector.multi_reduction <add>, %34, %cst_21 [0] : vector<4x8x8xf32> to vector<8x8xf32>
    %36 = vector.shape_cast %35 : vector<8x8xf32> to vector<1x8x8xf32>
    %cst_22 = arith.constant 4.000000e+00 : f32
    %37 = vector.broadcast %cst_22 : f32 to vector<1x8x8xf32>
    %38 = arith.divf %36, %37 : vector<1x8x8xf32>
    %39 = vector.broadcast %31 : vector<1x8x8xf32> to vector<4x8x8xf32>
    %40 = arith.subf %12, %39 : vector<4x8x8xf32>
    %cst_23 = arith.constant 9.99999974E-6 : f32
    %41 = vector.broadcast %cst_23 : f32 to vector<1x8x8xf32>
    %42 = arith.addf %38, %41 : vector<1x8x8xf32>
    %43 = math.rsqrt %42 : vector<1x8x8xf32>
    %44 = vector.broadcast %43 : vector<1x8x8xf32> to vector<4x8x8xf32>
    %45 = arith.mulf %40, %44 : vector<4x8x8xf32>
    %c0_24 = arith.constant 0 : index
    %c0_25 = arith.constant 0 : index
    %c0_26 = arith.constant 0 : index
    %46 = vector.load %arg5[%c0_24, %c0_25, %c0_26] : memref<4x1x1xf32, #tpu.memory_space<vmem>>, vector<4x1x1xf32>
    %47 = vector.broadcast %46 : vector<4x1x1xf32> to vector<4x8x8xf32>
    %48 = arith.mulf %45, %47 : vector<4x8x8xf32>
    %c0_27 = arith.constant 0 : index
    %c0_28 = arith.constant 0 : index
    %c0_29 = arith.constant 0 : index
    %49 = vector.load %arg6[%c0_27, %c0_28, %c0_29] : memref<4x1x1xf32, #tpu.memory_space<vmem>>, vector<4x1x1xf32>
    %50 = vector.broadcast %49 : vector<4x1x1xf32> to vector<4x8x8xf32>
    %51 = arith.addf %48, %50 : vector<4x8x8xf32>
    %52 = tpu.transpose %1, [1, 0, 2] : vector<4x8x8xf32> -> vector<8x4x8xf32>
    %53 = tpu.transpose %52, [0, 2, 1] : vector<8x4x8xf32> -> vector<8x8x4xf32>
    %c0_30 = arith.constant 0 : index
    %c0_31 = arith.constant 0 : index
    %c0_32 = arith.constant 0 : index
    %c0_33 = arith.constant 0 : index
    %54 = vector.load %arg7[%c0_30, %c0_31, %c0_32, %c0_33] : memref<1x8x8x4xf32, #tpu.memory_space<vmem>>, vector<1x8x8x4xf32>
    %55 = vector.shape_cast %54 : vector<1x8x8x4xf32> to vector<8x8x4xf32>
    %56 = vector.shape_cast %53 : vector<8x8x4xf32> to vector<1x8x8x4xf32>
    tpu.vector_store %arg7[%c0_30, %c0_31, %c0_32, %c0_33], %56 {strides = array<i32>} : memref<1x8x8x4xf32, #tpu.memory_space<vmem>>, vector<1x8x8x4xf32>,
    %57 = tpu.transpose %51, [1, 0, 2] : vector<4x8x8xf32> -> vector<8x4x8xf32>
    %58 = tpu.transpose %57, [0, 2, 1] : vector<8x4x8xf32> -> vector<8x8x4xf32>
    %c0_34 = arith.constant 0 : index
    %c0_35 = arith.constant 0 : index
    %c0_36 = arith.constant 0 : index
    %c0_37 = arith.constant 0 : index
    %59 = vector.load %arg8[%c0_34, %c0_35, %c0_36, %c0_37] : memref<1x8x8x4xf32, #tpu.memory_space<vmem>>, vector<1x8x8x4xf32>
    %60 = vector.shape_cast %59 : vector<1x8x8x4xf32> to vector<8x8x4xf32>
    %61 = vector.shape_cast %58 : vector<8x8x4xf32> to vector<1x8x8x4xf32>
    tpu.vector_store %arg8[%c0_34, %c0_35, %c0_36, %c0_37], %61 {strides = array<i32>} : memref<1x8x8x4xf32, #tpu.memory_space<vmem>>, vector<1x8x8x4xf32>,
    return
  }
  func.func @transform_0(%arg0: i32, %arg1: i32) -> (i32, i32, i32, i32) {
    %c0_i32 = arith.constant 0 : i32
    %c0_i32_0 = arith.constant 0 : i32
    %c0_i32_1 = arith.constant 0 : i32
    return %arg0, %c0_i32, %arg1, %c0_i32_0 : i32, i32, i32, i32
  }
  func.func @transform_1(%arg0: i32, %arg1: i32) -> (i32, i32, i32, i32) {
    %c0_i32 = arith.constant 0 : i32
    %c0_i32_0 = arith.constant 0 : i32
    %c0_i32_1 = arith.constant 0 : i32
    return %arg0, %c0_i32, %arg1, %c0_i32_0 : i32, i32, i32, i32
  }
  func.func @transform_2(%arg0: i32, %arg1: i32) -> (i32, i32, i32) {
    %c0_i32 = arith.constant 0 : i32
    %c0_i32_0 = arith.constant 0 : i32
    %c0_i32_1 = arith.constant 0 : i32
    return %arg0, %c0_i32, %c0_i32_0 : i32, i32, i32
  }
  func.func @transform_3(%arg0: i32, %arg1: i32) -> (i32, i32, i32) {
    %c0_i32 = arith.constant 0 : i32
    %c0_i32_0 = arith.constant 0 : i32
    %c0_i32_1 = arith.constant 0 : i32
    %c0_i32_2 = arith.constant 0 : i32
    return %c0_i32, %c0_i32_0, %c0_i32_1 : i32, i32, i32
  }
  func.func @transform_4(%arg0: i32, %arg1: i32) -> (i32, i32, i32) {
    %c0_i32 = arith.constant 0 : i32
    %c0_i32_0 = arith.constant 0 : i32
    %c0_i32_1 = arith.constant 0 : i32
    %c0_i32_2 = arith.constant 0 : i32
    return %c0_i32, %c0_i32_0, %c0_i32_1 : i32, i32, i32
  }
  func.func @transform_5(%arg0: i32, %arg1: i32) -> (i32, i32, i32, i32) {
    %c0_i32 = arith.constant 0 : i32
    %c0_i32_0 = arith.constant 0 : i32
    %c0_i32_1 = arith.constant 0 : i32
    return %arg0, %arg1, %c0_i32, %c0_i32_0 : i32, i32, i32, i32
  }
  func.func @transform_6(%arg0: i32, %arg1: i32) -> (i32, i32, i32, i32) {
    %c0_i32 = arith.constant 0 : i32
    %c0_i32_0 = arith.constant 0 : i32
    %c0_i32_1 = arith.constant 0 : i32
    return %arg0, %arg1, %c0_i32, %c0_i32_0 : i32, i32, i32, i32
  }
  func.func @transform_7(%arg0: i32, %arg1: i32) -> (i32, i32, i32) {
    %c0_i32 = arith.constant 0 : i32
    %c0_i32_0 = arith.constant 0 : i32
    return %arg0, %arg1, %c0_i32 : i32, i32, i32
  }
}

module attributes {stable_mosaic.version = 11 : i64} {
  func.func @_encoder_layer_kernel(%arg0: i32, %arg1: i32, %arg2: memref<1x8x32xf32, #tpu.memory_space<vmem>>, %arg3: memref<1x4x8x8xf32, #tpu.memory_space<vmem>>, %arg4: memref<1x32xf32, #tpu.memory_space<vmem>>, %arg5: memref<1x32xf32, #tpu.memory_space<vmem>>, %arg6: memref<3x32x32xbf16, #tpu.memory_space<vmem>>, %arg7: memref<3x32xf32, #tpu.memory_space<vmem>>, %arg8: memref<32x32xbf16, #tpu.memory_space<vmem>>, %arg9: memref<1x32xf32, #tpu.memory_space<vmem>>, %arg10: memref<1x32xf32, #tpu.memory_space<vmem>>, %arg11: memref<1x32xf32, #tpu.memory_space<vmem>>, %arg12: memref<32x64xbf16, #tpu.memory_space<vmem>>, %arg13: memref<1x64xf32, #tpu.memory_space<vmem>>, %arg14: memref<64x32xbf16, #tpu.memory_space<vmem>>, %arg15: memref<1x32xf32, #tpu.memory_space<vmem>>, %arg16: memref<1x8x32xf32, #tpu.memory_space<vmem>>, %arg17: memref<1x4x8x8xf32, #tpu.memory_space<vmem>>, %arg18: memref<8x32xbf16, #tpu.memory_space<vmem>>, %arg19: memref<8x32xf32, #tpu.memory_space<vmem>>) attributes {dimension_semantics = [#tpu.dimension_semantics<parallel>, #tpu.dimension_semantics<arbitrary>], iteration_bounds = array<i64: 2, 1>, scalar_prefetch = 0 : i64, scratch_operands = 2 : i64, tpu.core_type = #tpu.core_type<tc>, window_params = [{transform_indices = @transform_0, window_bounds = array<i64: 1, 8, 32>}, {transform_indices = @transform_1, window_bounds = array<i64: 1, 4, 8, 8>}, {pipeline_mode = #tpu.pipeline_mode<synchronous>, transform_indices = @transform_2, window_bounds = array<i64: 1, 32>}, {pipeline_mode = #tpu.pipeline_mode<synchronous>, transform_indices = @transform_3, window_bounds = array<i64: 1, 32>}, {transform_indices = @transform_4, window_bounds = array<i64: 3, 32, 32>}, {transform_indices = @transform_5, window_bounds = array<i64: 3, 32>}, {transform_indices = @transform_6, window_bounds = array<i64: 32, 32>}, {pipeline_mode = #tpu.pipeline_mode<synchronous>, transform_indices = @transform_7, window_bounds = array<i64: 1, 32>}, {pipeline_mode = #tpu.pipeline_mode<synchronous>, transform_indices = @transform_8, window_bounds = array<i64: 1, 32>}, {pipeline_mode = #tpu.pipeline_mode<synchronous>, transform_indices = @transform_9, window_bounds = array<i64: 1, 32>}, {pipeline_mode = #tpu.pipeline_mode<synchronous>, transform_indices = @transform_10, window_bounds = array<i64: 32, 64>}, {pipeline_mode = #tpu.pipeline_mode<synchronous>, transform_indices = @transform_11, window_bounds = array<i64: 1, 64>}, {pipeline_mode = #tpu.pipeline_mode<synchronous>, transform_indices = @transform_12, window_bounds = array<i64: 64, 32>}, {pipeline_mode = #tpu.pipeline_mode<synchronous>, transform_indices = @transform_13, window_bounds = array<i64: 1, 32>}, {transform_indices = @transform_14, window_bounds = array<i64: 1, 8, 32>}, {transform_indices = @transform_15, window_bounds = array<i64: 1, 4, 8, 8>}]} {
    %c0_i32 = arith.constant 0 : i32
    %0 = arith.cmpi eq, %arg1, %c0_i32 : i32
    %1 = arith.extui %0 : i1 to i32
    %c0_i32_0 = arith.constant 0 : i32
    %2 = arith.cmpi ne, %1, %c0_i32_0 : i32
    scf.if %2 {
      %c0_42 = arith.constant 0 : index
      %c0_43 = arith.constant 0 : index
      %c0_44 = arith.constant 0 : index
      %75 = vector.load %arg2[%c0_42, %c0_43, %c0_44] : memref<1x8x32xf32, #tpu.memory_space<vmem>>, vector<1x8x32xf32>
      %76 = vector.shape_cast %75 : vector<1x8x32xf32> to vector<8x32xf32>
      %cst_45 = arith.constant dense<0.000000e+00> : vector<8xf32>
      %77 = vector.multi_reduction <add>, %76, %cst_45 [1] : vector<8x32xf32> to vector<8xf32>
      %78 = vector.shape_cast %77 : vector<8xf32> to vector<8x1xf32>
      %cst_46 = arith.constant 3.200000e+01 : f32
      %79 = vector.broadcast %cst_46 : f32 to vector<8x1xf32>
      %80 = arith.divf %78, %79 : vector<8x1xf32>
      %81 = vector.broadcast %80 : vector<8x1xf32> to vector<8x32xf32>
      %82 = arith.subf %76, %81 : vector<8x32xf32>
      %83 = arith.mulf %82, %82 : vector<8x32xf32>
      %cst_47 = arith.constant dense<0.000000e+00> : vector<8xf32>
      %84 = vector.multi_reduction <add>, %83, %cst_47 [1] : vector<8x32xf32> to vector<8xf32>
      %85 = vector.shape_cast %84 : vector<8xf32> to vector<8x1xf32>
      %cst_48 = arith.constant 3.200000e+01 : f32
      %86 = vector.broadcast %cst_48 : f32 to vector<8x1xf32>
      %87 = arith.divf %85, %86 : vector<8x1xf32>
      %88 = vector.broadcast %80 : vector<8x1xf32> to vector<8x32xf32>
      %89 = arith.subf %76, %88 : vector<8x32xf32>
      %cst_49 = arith.constant 9.99999974E-6 : f32
      %90 = vector.broadcast %cst_49 : f32 to vector<8x1xf32>
      %91 = arith.addf %87, %90 : vector<8x1xf32>
      %92 = math.rsqrt %91 : vector<8x1xf32>
      %93 = vector.broadcast %92 : vector<8x1xf32> to vector<8x32xf32>
      %94 = arith.mulf %89, %93 : vector<8x32xf32>
      %c0_50 = arith.constant 0 : index
      %c0_51 = arith.constant 0 : index
      %95 = vector.load %arg4[%c0_50, %c0_51] : memref<1x32xf32, #tpu.memory_space<vmem>>, vector<1x32xf32>
      %96 = vector.broadcast %95 : vector<1x32xf32> to vector<8x32xf32>
      %97 = arith.mulf %94, %96 : vector<8x32xf32>
      %c0_52 = arith.constant 0 : index
      %c0_53 = arith.constant 0 : index
      %98 = vector.load %arg5[%c0_52, %c0_53] : memref<1x32xf32, #tpu.memory_space<vmem>>, vector<1x32xf32>
      %99 = vector.broadcast %98 : vector<1x32xf32> to vector<8x32xf32>
      %100 = arith.addf %97, %99 : vector<8x32xf32>
      %101 = arith.truncf %100 : vector<8x32xf32> to vector<8x32xbf16>
      %c0_54 = arith.constant 0 : index
      %c0_55 = arith.constant 0 : index
      %102 = vector.load %arg18[%c0_54, %c0_55] : memref<8x32xbf16, #tpu.memory_space<vmem>>, vector<8x32xbf16>
      tpu.vector_store %arg18[%c0_54, %c0_55], %101 {strides = array<i32>} : memref<8x32xbf16, #tpu.memory_space<vmem>>, vector<8x32xbf16>,
      %cst_56 = arith.constant 0.000000e+00 : f32
      %103 = vector.broadcast %cst_56 : f32 to vector<8x32xf32>
      %c0_57 = arith.constant 0 : index
      %c0_58 = arith.constant 0 : index
      %104 = vector.load %arg19[%c0_57, %c0_58] : memref<8x32xf32, #tpu.memory_space<vmem>>, vector<8x32xf32>
      tpu.vector_store %arg19[%c0_57, %c0_58], %103 {strides = array<i32>} : memref<8x32xf32, #tpu.memory_space<vmem>>, vector<8x32xf32>,
    } else {
    }
    %c0 = arith.constant 0 : index
    %c0_1 = arith.constant 0 : index
    %3 = vector.load %arg18[%c0, %c0_1] : memref<8x32xbf16, #tpu.memory_space<vmem>>, vector<8x32xbf16>
    %c0_2 = arith.constant 0 : index
    %c0_3 = arith.constant 0 : index
    %c0_4 = arith.constant 0 : index
    %4 = vector.load %arg6[%c0_2, %c0_3, %c0_4] : memref<3x32x32xbf16, #tpu.memory_space<vmem>>, vector<1x32x32xbf16>
    %5 = vector.shape_cast %4 : vector<1x32x32xbf16> to vector<32x32xbf16>
    %cst = arith.constant dense<0.000000e+00> : vector<8x32xf32>
    %6 = tpu.matmul %3, %5, %cst {dimension_numbers = #tpu.dot_dimension_numbers<[1], [0], [0], [1], [0, 0, 1, 1], [], []>} : vector<8x32xbf16>, vector<32x32xbf16>, vector<8x32xf32> -> vector<8x32xf32>
    %c0_5 = arith.constant 0 : index
    %c0_6 = arith.constant 0 : index
    %7 = vector.load %arg7[%c0_5, %c0_6] : memref<3x32xf32, #tpu.memory_space<vmem>>, vector<1x32xf32>
    %8 = vector.shape_cast %7 : vector<1x32xf32> to vector<32xf32>
    %9 = vector.shape_cast %8 : vector<32xf32> to vector<1x32xf32>
    %10 = vector.broadcast %9 : vector<1x32xf32> to vector<8x32xf32>
    %11 = arith.addf %6, %10 : vector<8x32xf32>
    %cst_7 = arith.constant 0.353553385 : f32
    %12 = vector.broadcast %cst_7 : f32 to vector<8x32xf32>
    %13 = arith.mulf %11, %12 : vector<8x32xf32>
    %c1 = arith.constant 1 : index
    %c0_8 = arith.constant 0 : index
    %c0_9 = arith.constant 0 : index
    %14 = vector.load %arg6[%c1, %c0_8, %c0_9] : memref<3x32x32xbf16, #tpu.memory_space<vmem>>, vector<1x32x32xbf16>
    %15 = vector.shape_cast %14 : vector<1x32x32xbf16> to vector<32x32xbf16>
    %cst_10 = arith.constant dense<0.000000e+00> : vector<8x32xf32>
    %16 = tpu.matmul %3, %15, %cst_10 {dimension_numbers = #tpu.dot_dimension_numbers<[1], [0], [0], [1], [0, 0, 1, 1], [], []>} : vector<8x32xbf16>, vector<32x32xbf16>, vector<8x32xf32> -> vector<8x32xf32>
    %c1_11 = arith.constant 1 : index
    %c0_12 = arith.constant 0 : index
    %17 = vector.load %arg7[%c1_11, %c0_12] : memref<3x32xf32, #tpu.memory_space<vmem>>, vector<1x32xf32>
    %18 = vector.shape_cast %17 : vector<1x32xf32> to vector<32xf32>
    %19 = vector.shape_cast %18 : vector<32xf32> to vector<1x32xf32>
    %20 = vector.broadcast %19 : vector<1x32xf32> to vector<8x32xf32>
    %21 = arith.addf %16, %20 : vector<8x32xf32>
    %c2 = arith.constant 2 : index
    %c0_13 = arith.constant 0 : index
    %c0_14 = arith.constant 0 : index
    %22 = vector.load %arg6[%c2, %c0_13, %c0_14] : memref<3x32x32xbf16, #tpu.memory_space<vmem>>, vector<1x32x32xbf16>
    %23 = vector.shape_cast %22 : vector<1x32x32xbf16> to vector<32x32xbf16>
    %cst_15 = arith.constant dense<0.000000e+00> : vector<8x32xf32>
    %24 = tpu.matmul %3, %23, %cst_15 {dimension_numbers = #tpu.dot_dimension_numbers<[1], [0], [0], [1], [0, 0, 1, 1], [], []>} : vector<8x32xbf16>, vector<32x32xbf16>, vector<8x32xf32> -> vector<8x32xf32>
    %c2_16 = arith.constant 2 : index
    %c0_17 = arith.constant 0 : index
    %25 = vector.load %arg7[%c2_16, %c0_17] : memref<3x32xf32, #tpu.memory_space<vmem>>, vector<1x32xf32>
    %26 = vector.shape_cast %25 : vector<1x32xf32> to vector<32xf32>
    %27 = vector.shape_cast %26 : vector<32xf32> to vector<1x32xf32>
    %28 = vector.broadcast %27 : vector<1x32xf32> to vector<8x32xf32>
    %29 = arith.addf %24, %28 : vector<8x32xf32>
    %30 = arith.truncf %13 : vector<8x32xf32> to vector<8x32xbf16>
    %31 = vector.shape_cast %30 : vector<8x32xbf16> to vector<8x4x8xbf16>
    %32 = tpu.transpose %31, [1, 0, 2] : vector<8x4x8xbf16> -> vector<4x8x8xbf16>
    %33 = arith.truncf %21 : vector<8x32xf32> to vector<8x32xbf16>
    %34 = vector.shape_cast %33 : vector<8x32xbf16> to vector<8x4x8xbf16>
    %35 = tpu.transpose %34, [1, 0, 2] : vector<8x4x8xbf16> -> vector<4x8x8xbf16>
    %36 = arith.truncf %29 : vector<8x32xf32> to vector<8x32xbf16>
    %37 = vector.shape_cast %36 : vector<8x32xbf16> to vector<8x4x8xbf16>
    %38 = tpu.transpose %37, [1, 0, 2] : vector<8x4x8xbf16> -> vector<4x8x8xbf16>
    "tpu.trace_start"() <{level = 10 : i32, message = "hqd,hkd->hqk"}> : () -> ()
    %cst_18 = arith.constant dense<0.000000e+00> : vector<4x8x8xf32>
    %39 = tpu.matmul %32, %35, %cst_18 {dimension_numbers = #tpu.dot_dimension_numbers<[2], [2], [1], [1], [0, 0, 0, 1, 1, 1], [0], [0]>} : vector<4x8x8xbf16>, vector<4x8x8xbf16>, vector<4x8x8xf32> -> vector<4x8x8xf32>
    "tpu.trace_stop"() : () -> ()
    %c0_19 = arith.constant 0 : index
    %c0_20 = arith.constant 0 : index
    %c0_21 = arith.constant 0 : index
    %c0_22 = arith.constant 0 : index
    %40 = vector.load %arg3[%c0_19, %c0_20, %c0_21, %c0_22] : memref<1x4x8x8xf32, #tpu.memory_space<vmem>>, vector<1x4x8x8xf32>
    %41 = vector.shape_cast %40 : vector<1x4x8x8xf32> to vector<4x8x8xf32>
    %42 = arith.addf %39, %41 : vector<4x8x8xf32>
    %c0_23 = arith.constant 0 : index
    %c0_24 = arith.constant 0 : index
    %c0_25 = arith.constant 0 : index
    %c0_26 = arith.constant 0 : index
    %43 = vector.load %arg17[%c0_23, %c0_24, %c0_25, %c0_26] : memref<1x4x8x8xf32, #tpu.memory_space<vmem>>, vector<1x4x8x8xf32>
    %44 = vector.shape_cast %43 : vector<1x4x8x8xf32> to vector<4x8x8xf32>
    %45 = vector.shape_cast %42 : vector<4x8x8xf32> to vector<1x4x8x8xf32>
    tpu.vector_store %arg17[%c0_23, %c0_24, %c0_25, %c0_26], %45 {strides = array<i32>} : memref<1x4x8x8xf32, #tpu.memory_space<vmem>>, vector<1x4x8x8xf32>,
    %cst_27 = arith.constant dense<0xFF800000> : vector<4x8xf32>
    %46 = vector.multi_reduction <maximumf>, %42, %cst_27 [2] : vector<4x8x8xf32> to vector<4x8xf32>
    %47 = vector.shape_cast %46 : vector<4x8xf32> to vector<4x8x1xf32>
    %cst_28 = arith.constant -1.000000e+30 : f32
    %48 = vector.broadcast %cst_28 : f32 to vector<4x8x1xf32>
    %49 = arith.maximumf %47, %48 : vector<4x8x1xf32>
    %50 = vector.broadcast %49 : vector<4x8x1xf32> to vector<4x8x8xf32>
    %51 = arith.subf %42, %50 : vector<4x8x8xf32>
    %52 = math.exp %51 : vector<4x8x8xf32>
    %cst_29 = arith.constant dense<0.000000e+00> : vector<4x8xf32>
    %53 = vector.multi_reduction <add>, %52, %cst_29 [2] : vector<4x8x8xf32> to vector<4x8xf32>
    %54 = vector.shape_cast %53 : vector<4x8xf32> to vector<4x8x1xf32>
    %cst_30 = arith.constant 0.000000e+00 : f32
    %55 = vector.broadcast %cst_30 : f32 to vector<4x8x1xf32>
    %56 = arith.cmpf ogt, %54, %55 : vector<4x8x1xf32>
    %cst_31 = arith.constant 1.000000e+00 : f32
    %57 = vector.broadcast %cst_31 : f32 to vector<4x8x1xf32>
    %58 = arith.select %56, %54, %57 : vector<4x8x1xi1>, vector<4x8x1xf32>
    %59 = tpu.reciprocal %58 {approx = true} : vector<4x8x1xf32> -> vector<4x8x1xf32>
    %60 = vector.broadcast %59 : vector<4x8x1xf32> to vector<4x8x8xf32>
    %61 = arith.mulf %52, %60 : vector<4x8x8xf32>
    %62 = arith.truncf %61 : vector<4x8x8xf32> to vector<4x8x8xbf16>
    "tpu.trace_start"() <{level = 10 : i32, message = "hqk,hkd->hqd"}> : () -> ()
    %cst_32 = arith.constant dense<0.000000e+00> : vector<4x8x8xf32>
    %63 = tpu.matmul %62, %38, %cst_32 {dimension_numbers = #tpu.dot_dimension_numbers<[2], [1], [1], [2], [0, 0, 0, 1, 1, 2], [0], [0]>} : vector<4x8x8xbf16>, vector<4x8x8xbf16>, vector<4x8x8xf32> -> vector<4x8x8xf32>
    "tpu.trace_stop"() : () -> ()
    %64 = tpu.transpose %63, [1, 0, 2] : vector<4x8x8xf32> -> vector<8x4x8xf32>
    %65 = vector.shape_cast %64 : vector<8x4x8xf32> to vector<8x32xf32>
    %c0_33 = arith.constant 0 : index
    %c0_34 = arith.constant 0 : index
    %66 = vector.load %arg19[%c0_33, %c0_34] : memref<8x32xf32, #tpu.memory_space<vmem>>, vector<8x32xf32>
    %67 = arith.truncf %65 : vector<8x32xf32> to vector<8x32xbf16>
    %c0_35 = arith.constant 0 : index
    %c0_36 = arith.constant 0 : index
    %68 = vector.load %arg8[%c0_35, %c0_36] : memref<32x32xbf16, #tpu.memory_space<vmem>>, vector<32x32xbf16>
    %cst_37 = arith.constant dense<0.000000e+00> : vector<8x32xf32>
    %69 = tpu.matmul %67, %68, %cst_37 {dimension_numbers = #tpu.dot_dimension_numbers<[1], [0], [0], [1], [0, 0, 1, 1], [], []>} : vector<8x32xbf16>, vector<32x32xbf16>, vector<8x32xf32> -> vector<8x32xf32>
    %70 = arith.addf %66, %69 : vector<8x32xf32>
    %c0_38 = arith.constant 0 : index
    %c0_39 = arith.constant 0 : index
    %71 = vector.load %arg19[%c0_38, %c0_39] : memref<8x32xf32, #tpu.memory_space<vmem>>, vector<8x32xf32>
    tpu.vector_store %arg19[%c0_38, %c0_39], %70 {strides = array<i32>} : memref<8x32xf32, #tpu.memory_space<vmem>>, vector<8x32xf32>,
    %c0_i32_40 = arith.constant 0 : i32
    %72 = arith.cmpi eq, %arg1, %c0_i32_40 : i32
    %73 = arith.extui %72 : i1 to i32
    %c0_i32_41 = arith.constant 0 : i32
    %74 = arith.cmpi ne, %73, %c0_i32_41 : i32
    scf.if %74 {
      %c0_42 = arith.constant 0 : index
      %c0_43 = arith.constant 0 : index
      %c0_44 = arith.constant 0 : index
      %75 = vector.load %arg2[%c0_42, %c0_43, %c0_44] : memref<1x8x32xf32, #tpu.memory_space<vmem>>, vector<1x8x32xf32>
      %76 = vector.shape_cast %75 : vector<1x8x32xf32> to vector<8x32xf32>
      %c0_45 = arith.constant 0 : index
      %c0_46 = arith.constant 0 : index
      %77 = vector.load %arg19[%c0_45, %c0_46] : memref<8x32xf32, #tpu.memory_space<vmem>>, vector<8x32xf32>
      %78 = arith.addf %76, %77 : vector<8x32xf32>
      %c0_47 = arith.constant 0 : index
      %c0_48 = arith.constant 0 : index
      %79 = vector.load %arg9[%c0_47, %c0_48] : memref<1x32xf32, #tpu.memory_space<vmem>>, vector<1x32xf32>
      %80 = vector.broadcast %79 : vector<1x32xf32> to vector<8x32xf32>
      %81 = arith.addf %78, %80 : vector<8x32xf32>
      %cst_49 = arith.constant dense<0.000000e+00> : vector<8xf32>
      %82 = vector.multi_reduction <add>, %81, %cst_49 [1] : vector<8x32xf32> to vector<8xf32>
      %83 = vector.shape_cast %82 : vector<8xf32> to vector<8x1xf32>
      %cst_50 = arith.constant 3.200000e+01 : f32
      %84 = vector.broadcast %cst_50 : f32 to vector<8x1xf32>
      %85 = arith.divf %83, %84 : vector<8x1xf32>
      %86 = vector.broadcast %85 : vector<8x1xf32> to vector<8x32xf32>
      %87 = arith.subf %81, %86 : vector<8x32xf32>
      %88 = arith.mulf %87, %87 : vector<8x32xf32>
      %cst_51 = arith.constant dense<0.000000e+00> : vector<8xf32>
      %89 = vector.multi_reduction <add>, %88, %cst_51 [1] : vector<8x32xf32> to vector<8xf32>
      %90 = vector.shape_cast %89 : vector<8xf32> to vector<8x1xf32>
      %cst_52 = arith.constant 3.200000e+01 : f32
      %91 = vector.broadcast %cst_52 : f32 to vector<8x1xf32>
      %92 = arith.divf %90, %91 : vector<8x1xf32>
      %93 = vector.broadcast %85 : vector<8x1xf32> to vector<8x32xf32>
      %94 = arith.subf %81, %93 : vector<8x32xf32>
      %cst_53 = arith.constant 9.99999974E-6 : f32
      %95 = vector.broadcast %cst_53 : f32 to vector<8x1xf32>
      %96 = arith.addf %92, %95 : vector<8x1xf32>
      %97 = math.rsqrt %96 : vector<8x1xf32>
      %98 = vector.broadcast %97 : vector<8x1xf32> to vector<8x32xf32>
      %99 = arith.mulf %94, %98 : vector<8x32xf32>
      %c0_54 = arith.constant 0 : index
      %c0_55 = arith.constant 0 : index
      %100 = vector.load %arg10[%c0_54, %c0_55] : memref<1x32xf32, #tpu.memory_space<vmem>>, vector<1x32xf32>
      %101 = vector.broadcast %100 : vector<1x32xf32> to vector<8x32xf32>
      %102 = arith.mulf %99, %101 : vector<8x32xf32>
      %c0_56 = arith.constant 0 : index
      %c0_57 = arith.constant 0 : index
      %103 = vector.load %arg11[%c0_56, %c0_57] : memref<1x32xf32, #tpu.memory_space<vmem>>, vector<1x32xf32>
      %104 = vector.broadcast %103 : vector<1x32xf32> to vector<8x32xf32>
      %105 = arith.addf %102, %104 : vector<8x32xf32>
      %106 = arith.truncf %105 : vector<8x32xf32> to vector<8x32xbf16>
      %c0_58 = arith.constant 0 : index
      %c0_59 = arith.constant 0 : index
      %107 = vector.load %arg12[%c0_58, %c0_59] : memref<32x64xbf16, #tpu.memory_space<vmem>>, vector<32x64xbf16>
      %cst_60 = arith.constant dense<0.000000e+00> : vector<8x64xf32>
      %108 = tpu.matmul %106, %107, %cst_60 {dimension_numbers = #tpu.dot_dimension_numbers<[1], [0], [0], [1], [0, 0, 1, 1], [], []>} : vector<8x32xbf16>, vector<32x64xbf16>, vector<8x64xf32> -> vector<8x64xf32>
      %c0_61 = arith.constant 0 : index
      %c0_62 = arith.constant 0 : index
      %109 = vector.load %arg13[%c0_61, %c0_62] : memref<1x64xf32, #tpu.memory_space<vmem>>, vector<1x64xf32>
      %110 = vector.broadcast %109 : vector<1x64xf32> to vector<8x64xf32>
      %111 = arith.addf %108, %110 : vector<8x64xf32>
      %cst_63 = arith.constant 5.000000e-01 : f32
      %112 = vector.broadcast %cst_63 : f32 to vector<8x64xf32>
      %113 = arith.mulf %112, %111 : vector<8x64xf32>
      %cst_64 = arith.constant 0.707106769 : f32
      %114 = vector.broadcast %cst_64 : f32 to vector<8x64xf32>
      %115 = arith.mulf %111, %114 : vector<8x64xf32>
      %116 = math.erf %115 : vector<8x64xf32>
      %cst_65 = arith.constant 1.000000e+00 : f32
      %117 = vector.broadcast %cst_65 : f32 to vector<8x64xf32>
      %118 = arith.addf %117, %116 : vector<8x64xf32>
      %119 = arith.mulf %113, %118 : vector<8x64xf32>
      %120 = arith.truncf %119 : vector<8x64xf32> to vector<8x64xbf16>
      %c0_66 = arith.constant 0 : index
      %c0_67 = arith.constant 0 : index
      %121 = vector.load %arg14[%c0_66, %c0_67] : memref<64x32xbf16, #tpu.memory_space<vmem>>, vector<64x32xbf16>
      %cst_68 = arith.constant dense<0.000000e+00> : vector<8x32xf32>
      %122 = tpu.matmul %120, %121, %cst_68 {dimension_numbers = #tpu.dot_dimension_numbers<[1], [0], [0], [1], [0, 0, 1, 1], [], []>} : vector<8x64xbf16>, vector<64x32xbf16>, vector<8x32xf32> -> vector<8x32xf32>
      %c0_69 = arith.constant 0 : index
      %c0_70 = arith.constant 0 : index
      %123 = vector.load %arg15[%c0_69, %c0_70] : memref<1x32xf32, #tpu.memory_space<vmem>>, vector<1x32xf32>
      %124 = vector.broadcast %123 : vector<1x32xf32> to vector<8x32xf32>
      %125 = arith.addf %122, %124 : vector<8x32xf32>
      %126 = arith.addf %81, %125 : vector<8x32xf32>
      %c0_71 = arith.constant 0 : index
      %c0_72 = arith.constant 0 : index
      %c0_73 = arith.constant 0 : index
      %127 = vector.load %arg16[%c0_71, %c0_72, %c0_73] : memref<1x8x32xf32, #tpu.memory_space<vmem>>, vector<1x8x32xf32>
      %128 = vector.shape_cast %127 : vector<1x8x32xf32> to vector<8x32xf32>
      %129 = vector.shape_cast %126 : vector<8x32xf32> to vector<1x8x32xf32>
      tpu.vector_store %arg16[%c0_71, %c0_72, %c0_73], %129 {strides = array<i32>} : memref<1x8x32xf32, #tpu.memory_space<vmem>>, vector<1x8x32xf32>,
    } else {
    }
    return
  }
  func.func @transform_0(%arg0: i32, %arg1: i32) -> (i32, i32, i32) {
    %c0_i32 = arith.constant 0 : i32
    %c0_i32_0 = arith.constant 0 : i32
    %c0_i32_1 = arith.constant 0 : i32
    return %arg0, %c0_i32, %c0_i32_0 : i32, i32, i32
  }
  func.func @transform_1(%arg0: i32, %arg1: i32) -> (i32, i32, i32, i32) {
    %c0_i32 = arith.constant 0 : i32
    %c0_i32_0 = arith.constant 0 : i32
    %c0_i32_1 = arith.constant 0 : i32
    return %arg0, %arg1, %c0_i32, %c0_i32_0 : i32, i32, i32, i32
  }
  func.func @transform_2(%arg0: i32, %arg1: i32) -> (i32, i32) {
    %c0_i32 = arith.constant 0 : i32
    %c0_i32_0 = arith.constant 0 : i32
    %c0_i32_1 = arith.constant 0 : i32
    return %c0_i32, %c0_i32_0 : i32, i32
  }
  func.func @transform_3(%arg0: i32, %arg1: i32) -> (i32, i32) {
    %c0_i32 = arith.constant 0 : i32
    %c0_i32_0 = arith.constant 0 : i32
    %c0_i32_1 = arith.constant 0 : i32
    return %c0_i32, %c0_i32_0 : i32, i32
  }
  func.func @transform_4(%arg0: i32, %arg1: i32) -> (i32, i32, i32) {
    %c0_i32 = arith.constant 0 : i32
    %c0_i32_0 = arith.constant 0 : i32
    %c0_i32_1 = arith.constant 0 : i32
    return %c0_i32, %c0_i32_0, %arg1 : i32, i32, i32
  }
  func.func @transform_5(%arg0: i32, %arg1: i32) -> (i32, i32) {
    %c0_i32 = arith.constant 0 : i32
    %c0_i32_0 = arith.constant 0 : i32
    return %c0_i32, %arg1 : i32, i32
  }
  func.func @transform_6(%arg0: i32, %arg1: i32) -> (i32, i32) {
    %c0_i32 = arith.constant 0 : i32
    %c0_i32_0 = arith.constant 0 : i32
    return %arg1, %c0_i32 : i32, i32
  }
  func.func @transform_7(%arg0: i32, %arg1: i32) -> (i32, i32) {
    %c0_i32 = arith.constant 0 : i32
    %c0_i32_0 = arith.constant 0 : i32
    %c0_i32_1 = arith.constant 0 : i32
    return %c0_i32, %c0_i32_0 : i32, i32
  }
  func.func @transform_8(%arg0: i32, %arg1: i32) -> (i32, i32) {
    %c0_i32 = arith.constant 0 : i32
    %c0_i32_0 = arith.constant 0 : i32
    %c0_i32_1 = arith.constant 0 : i32
    return %c0_i32, %c0_i32_0 : i32, i32
  }
  func.func @transform_9(%arg0: i32, %arg1: i32) -> (i32, i32) {
    %c0_i32 = arith.constant 0 : i32
    %c0_i32_0 = arith.constant 0 : i32
    %c0_i32_1 = arith.constant 0 : i32
    return %c0_i32, %c0_i32_0 : i32, i32
  }
  func.func @transform_10(%arg0: i32, %arg1: i32) -> (i32, i32) {
    %c0_i32 = arith.constant 0 : i32
    %c0_i32_0 = arith.constant 0 : i32
    %c0_i32_1 = arith.constant 0 : i32
    return %c0_i32, %c0_i32_0 : i32, i32
  }
  func.func @transform_11(%arg0: i32, %arg1: i32) -> (i32, i32) {
    %c0_i32 = arith.constant 0 : i32
    %c0_i32_0 = arith.constant 0 : i32
    %c0_i32_1 = arith.constant 0 : i32
    return %c0_i32, %c0_i32_0 : i32, i32
  }
  func.func @transform_12(%arg0: i32, %arg1: i32) -> (i32, i32) {
    %c0_i32 = arith.constant 0 : i32
    %c0_i32_0 = arith.constant 0 : i32
    %c0_i32_1 = arith.constant 0 : i32
    return %c0_i32, %c0_i32_0 : i32, i32
  }
  func.func @transform_13(%arg0: i32, %arg1: i32) -> (i32, i32) {
    %c0_i32 = arith.constant 0 : i32
    %c0_i32_0 = arith.constant 0 : i32
    %c0_i32_1 = arith.constant 0 : i32
    return %c0_i32, %c0_i32_0 : i32, i32
  }
  func.func @transform_14(%arg0: i32, %arg1: i32) -> (i32, i32, i32) {
    %c0_i32 = arith.constant 0 : i32
    %c0_i32_0 = arith.constant 0 : i32
    %c0_i32_1 = arith.constant 0 : i32
    return %arg0, %c0_i32, %c0_i32_0 : i32, i32, i32
  }
  func.func @transform_15(%arg0: i32, %arg1: i32) -> (i32, i32, i32, i32) {
    %c0_i32 = arith.constant 0 : i32
    %c0_i32_0 = arith.constant 0 : i32
    %c0_i32_1 = arith.constant 0 : i32
    return %arg0, %arg1, %c0_i32, %c0_i32_0 : i32, i32, i32, i32
  }
}

module attributes {stable_mosaic.version = 11 : i64} {
  func.func @_ln_mask_kernel(%arg0: i32, %arg1: memref<16x32xf32, #tpu.memory_space<vmem>>, %arg2: memref<1x32xf32, #tpu.memory_space<vmem>>, %arg3: memref<1x32xf32, #tpu.memory_space<vmem>>, %arg4: memref<16x1xf32, #tpu.memory_space<vmem>>, %arg5: memref<16x32xf32, #tpu.memory_space<vmem>>) attributes {dimension_semantics = [#tpu.dimension_semantics<parallel>], iteration_bounds = array<i64: 1>, scalar_prefetch = 0 : i64, scratch_operands = 0 : i64, tpu.core_type = #tpu.core_type<tc>, window_params = [{transform_indices = @transform_0, window_bounds = array<i64: 16, 32>}, {pipeline_mode = #tpu.pipeline_mode<synchronous>, transform_indices = @transform_1, window_bounds = array<i64: 1, 32>}, {pipeline_mode = #tpu.pipeline_mode<synchronous>, transform_indices = @transform_2, window_bounds = array<i64: 1, 32>}, {transform_indices = @transform_3, window_bounds = array<i64: 16, 1>}, {transform_indices = @transform_4, window_bounds = array<i64: 16, 32>}]} {
    %c0 = arith.constant 0 : index
    %c0_0 = arith.constant 0 : index
    %0 = vector.load %arg1[%c0, %c0_0] : memref<16x32xf32, #tpu.memory_space<vmem>>, vector<16x32xf32>
    %cst = arith.constant dense<0.000000e+00> : vector<16xf32>
    %1 = vector.multi_reduction <add>, %0, %cst [1] : vector<16x32xf32> to vector<16xf32>
    %2 = vector.shape_cast %1 : vector<16xf32> to vector<16x1xf32>
    %cst_1 = arith.constant 3.200000e+01 : f32
    %3 = vector.broadcast %cst_1 : f32 to vector<16x1xf32>
    %4 = arith.divf %2, %3 : vector<16x1xf32>
    %5 = vector.broadcast %4 : vector<16x1xf32> to vector<16x32xf32>
    %6 = arith.subf %0, %5 : vector<16x32xf32>
    %7 = arith.mulf %6, %6 : vector<16x32xf32>
    %cst_2 = arith.constant dense<0.000000e+00> : vector<16xf32>
    %8 = vector.multi_reduction <add>, %7, %cst_2 [1] : vector<16x32xf32> to vector<16xf32>
    %9 = vector.shape_cast %8 : vector<16xf32> to vector<16x1xf32>
    %cst_3 = arith.constant 3.200000e+01 : f32
    %10 = vector.broadcast %cst_3 : f32 to vector<16x1xf32>
    %11 = arith.divf %9, %10 : vector<16x1xf32>
    %12 = vector.broadcast %4 : vector<16x1xf32> to vector<16x32xf32>
    %13 = arith.subf %0, %12 : vector<16x32xf32>
    %cst_4 = arith.constant 9.99999974E-6 : f32
    %14 = vector.broadcast %cst_4 : f32 to vector<16x1xf32>
    %15 = arith.addf %11, %14 : vector<16x1xf32>
    %16 = math.rsqrt %15 : vector<16x1xf32>
    %17 = vector.broadcast %16 : vector<16x1xf32> to vector<16x32xf32>
    %18 = arith.mulf %13, %17 : vector<16x32xf32>
    %c0_5 = arith.constant 0 : index
    %c0_6 = arith.constant 0 : index
    %19 = vector.load %arg2[%c0_5, %c0_6] : memref<1x32xf32, #tpu.memory_space<vmem>>, vector<1x32xf32>
    %20 = vector.broadcast %19 : vector<1x32xf32> to vector<16x32xf32>
    %21 = arith.mulf %18, %20 : vector<16x32xf32>
    %c0_7 = arith.constant 0 : index
    %c0_8 = arith.constant 0 : index
    %22 = vector.load %arg3[%c0_7, %c0_8] : memref<1x32xf32, #tpu.memory_space<vmem>>, vector<1x32xf32>
    %23 = vector.broadcast %22 : vector<1x32xf32> to vector<16x32xf32>
    %24 = arith.addf %21, %23 : vector<16x32xf32>
    %c0_9 = arith.constant 0 : index
    %c0_10 = arith.constant 0 : index
    %25 = vector.load %arg4[%c0_9, %c0_10] : memref<16x1xf32, #tpu.memory_space<vmem>>, vector<16x1xf32>
    %26 = vector.broadcast %25 : vector<16x1xf32> to vector<16x32xf32>
    %27 = arith.mulf %24, %26 : vector<16x32xf32>
    %c0_11 = arith.constant 0 : index
    %c0_12 = arith.constant 0 : index
    %28 = vector.load %arg5[%c0_11, %c0_12] : memref<16x32xf32, #tpu.memory_space<vmem>>, vector<16x32xf32>
    tpu.vector_store %arg5[%c0_11, %c0_12], %27 {strides = array<i32>} : memref<16x32xf32, #tpu.memory_space<vmem>>, vector<16x32xf32>,
    return
  }
  func.func @transform_0(%arg0: i32) -> (i32, i32) {
    %c0_i32 = arith.constant 0 : i32
    %c0_i32_0 = arith.constant 0 : i32
    return %arg0, %c0_i32 : i32, i32
  }
  func.func @transform_1(%arg0: i32) -> (i32, i32) {
    %c0_i32 = arith.constant 0 : i32
    %c0_i32_0 = arith.constant 0 : i32
    %c0_i32_1 = arith.constant 0 : i32
    return %c0_i32, %c0_i32_0 : i32, i32
  }
  func.func @transform_2(%arg0: i32) -> (i32, i32) {
    %c0_i32 = arith.constant 0 : i32
    %c0_i32_0 = arith.constant 0 : i32
    %c0_i32_1 = arith.constant 0 : i32
    return %c0_i32, %c0_i32_0 : i32, i32
  }
  func.func @transform_3(%arg0: i32) -> (i32, i32) {
    %c0_i32 = arith.constant 0 : i32
    %c0_i32_0 = arith.constant 0 : i32
    return %arg0, %c0_i32 : i32, i32
  }
  func.func @transform_4(%arg0: i32) -> (i32, i32) {
    %c0_i32 = arith.constant 0 : i32
    %c0_i32_0 = arith.constant 0 : i32
    return %arg0, %c0_i32 : i32, i32
  }
}

</mosaic_0001>

<bundles_post_ra>
// kernel: transformer_encoder_with_pair.5
= control target key start
LH: loop header
LB: loop body
LE: loop exit
PB: predicated region body
PF: predicated region fallthrough
CT: control target
= control target key end

     0   :  { %vm19_vm0 = vcmask 261120   ;;  %v94_v4 = vmov 0   ;;  %s150_s0 = inlined_call_operand.vmem [shape: f32[16,32], index: 0, kind: input, shape index: {}]   ;;  %s151_s3 = inlined_call_operand.vmem [shape: f32[16,1], index: 3, kind: input, shape index: {}]   ;;  %s152_s1 = inlined_call_operand.vmem [shape: f32[1,32], index: 1, kind: input, shape index: {}]   ;;  %s153_s2 = inlined_call_operand.vmem [shape: f32[1,32], index: 2, kind: input, shape index: {}]   ;;  %s154_s4 = inlined_call_operand.vmem [shape: f32[16,32], index: 4, kind: output, shape index: {}]  }
   0x1   :  { %v17_v0 = vld [vmem:[%s150_s0] sm:$0xff]  ;;  %v18_v1 = vld [vmem:[%s150_s0 + $0x8] sm:$0xff]  ;;  %88 = vset.pattern.permute.xlu0 %v94_v4  ;;  %89 = vset.pattern.permute.xlu1 %v94_v4 }
   0x2   :  { %v20_v2 = vsel %vm19_vm0, %v17_v0, 0.0  ;;  %v23_v3 = vsel %vm19_vm0, %v18_v1, 0.0  ;;  %v65_v5 = vld [vmem:[%s151_s3] sm:$0xff]  ;;  %v66_v16 = vld [vmem:[%s151_s3 + $0x8] sm:$0xff] }
   0x3   :  { %21 = vadd.xlane.f32.xlu0 %v20_v2  ;;  %v85_v24 = vld [vmem:[%s152_s1] ss:$0 sm:$0xff] }
   0x4   :  { %v86_v26 = vld [vmem:[%s153_s2] ss:$0 sm:$0xff] }
   0x7   :  { %24 = vadd.xlane.f32.xlu0 %v23_v3 }
  0x1d   :  { %69 = vperm.xlu0 %88, %v65_v5  }
  0x8c   :  { %v22_v6 = vpop.xlane.xlu0 %21 }
  0x8d   :  { %v27_v7 = vmul.f32 0.03125, %v22_v6 }
  0x8f   :  { %v29_v8 = vsub.f32 %v17_v0, %v27_v7 }
  0x90   :  { %v25_v9 = vpop.xlane.xlu0 %24 }
  0x91   :  { %v28_v10 = vmul.f32 0.03125, %v25_v9  ;;  %v31_v11 = vmul.f32 %v29_v8, %v29_v8 }
  0x93   :  { %v30_v12 = vsub.f32 %v18_v1, %v28_v10  ;;  %v33_v13 = vsel %vm19_vm0, %v31_v11, 0.0 }
  0x94   :  { %34 = vadd.xlane.f32.xlu1 %v33_v13 }
  0x95   :  { %v32_v14 = vmul.f32 %v30_v12, %v30_v12 }
  0x97   :  { %v36_v15 = vsel %vm19_vm0, %v32_v14, 0.0 }
  0x98   :  { %37 = vadd.xlane.f32.xlu1 %v36_v15  ;;  %v70_v29 = vpop.permute.xlu0 %69 }
  0xa9   :  { %74 = vperm.xlu1 %89, %v66_v16  }
 0x11d   :  { %v35_v17 = vpop.xlane.xlu1 %34 }
 0x11e   :  { %v39_v18 = vmul.f32 0.03125, %v35_v17 }
 0x120   :  { %v41_v19 = vadd.f32 1e-05, %v39_v18 }
 0x121   :  { %v38_v20 = vpop.xlane.xlu1 %37 }
 0x122   :  { %90 = vrsqrt.f32 %v41_v19  ;;  %v40_v21 = vmul.f32 0.03125, %v38_v20 }
 0x124   :  { %v42_v22 = vadd.f32 1e-05, %v40_v21 }
 0x125   :  { %v75_v34 = vpop.permute.xlu1 %74 }
 0x126   :  { %92 = vrsqrt.f32 %v42_v22 }
 0x12f   :  { %v91_v23 = vpop.eup %90 }
 0x130   :  { %v45_v25 = vmul.f32 %v91_v23, %v29_v8 }
 0x132   :  { %v54_v27 = vmul.f32 %v85_v24, %v45_v25 }
 0x133   :  { %v93_v28 = vpop.eup %92 }
 0x134   :  { %v63_v30 = vadd.f32 %v86_v26, %v54_v27  ;;  %v46_v31 = vmul.f32 %v93_v28, %v30_v12 }
 0x136   :  { %v77_v32 = vmul.f32 %v70_v29, %v63_v30  ;;  %v55_v33 = vmul.f32 %v85_v24, %v46_v31 }
 0x138   :  { %79 = vst.msk [vmem:[%s154_s4] sm:$0xff] %vm19_vm0, %v77_v32  ;;  %v64_v35 = vadd.f32 %v86_v26, %v55_v33 }
 0x13a   :  { %v78_v36 = vmul.f32 %v75_v34, %v64_v35 }
 0x13c   :  { %80 = vst.msk [vmem:[%s154_s4 + $0x8] sm:$0xff] %vm19_vm0, %v78_v36 }

// kernel: transformer_encoder_with_pair.9
= control target key start
LH: loop header
LB: loop body
LE: loop exit
PB: predicated region body
PF: predicated region fallthrough
CT: control target
= control target key end

     0   :  { %s1570_s24 = smov 0   ;;  %s1572_s25 = smov 0   ;;  %s1719_s0 = inlined_call_operand.vmem [shape: f32[2,4,8,8], index: 0, kind: input, shape index: {}]   ;;  %s1720_s1 = inlined_call_operand.vmem [shape: f32[2,4,8,8], index: 1, kind: input, shape index: {}]   ;;  %s1721_s2 = inlined_call_operand.vmem [shape: f32[2,1,8], index: 2, kind: input, shape index: {}]   ;;  %s1722_s3 = inlined_call_operand.vmem [shape: f32[4,1,1], index: 3, kind: input, shape index: {}]   ;;  %s1723_s4 = inlined_call_operand.vmem [shape: f32[4,1,1], index: 4, kind: input, shape index: {}]   ;;  %s1724_s5 = inlined_call_operand.vmem [shape: f32[2,8,8,4], index: 5, kind: output, shape index: {0}]   ;;  %s1725_s6 = inlined_call_operand.vmem [shape: f32[2,8,8,4], index: 6, kind: output, shape index: {1}]   ;;  %s1726_s7 = inlined_call_operand.vmem [shape: f32[2,8,8], index: 7, kind: output, shape index: {2}]  }
   0x1   :  { %s1574_s26 = smov 0  }
   0x2 LB: > { %s30_s27 = sadd.s32 1, %s1520_s25  ;;  %p1442_p0 = scmp.ge.s32.totalorder %s1524_s26, 1  ;;  %s1524_s26 = sphi %s1574_s26, %s18_s26   ;;  %s1520_s25 = sphi %s1572_s25, %s1728_s25   ;;  %s1516_s24 = sphi %s1570_s24, %s1727_s24  }
   0x3   : > { %p32_p1 = scmp.ge.s32.totalorder %s30_s27, 2  ;;  %p288_p2 = scmp.lt.s32.totalorder %s1524_s26, 3 }
   0x5   : > { %s1730_s27 = smov (%p32_p1, %s30_s27), 0  ;;  %p289_p3 = pnand %p1442_p0, %p288_p2 }
   0x6   : > { %p354_p4 = scmp.lt.s32.totalorder (!%p289_p3), %s1516_s24, 1 }
   0x7   : > { %292 = sbr.rel (%p289_p3) target bundleno = 300 (0x12c), region = 40 }
   0xc   : > { %v415_v0 = vlaneseq  ;;  %v1526_v1 = vmov 0   ;;  %v1456_v2 = vld [vmem:[%s1722_s3 + $0x2] ss:$0 sm:$0xff]  ;;  %v1454_v3 = vld [vmem:[%s1722_s3] ss:$0 sm:$0xff]  ;;  %s1732_s24 = smov (!%p354_p4, %s1516_s24), 1 }
   0xd   : > { %1497 = vset.pattern.permute.xlu1 %v1526_v1  ;;  %1496 = vset.pattern.permute.xlu0 %v1526_v1  ;;  %v1457_v5 = vld [vmem:[%s1722_s3 + $0x3] ss:$0 sm:$0xff]  ;;  %v1455_v6 = vld [vmem:[%s1722_s3 + $0x1] ss:$0 sm:$0xff]  ;;  %s1464_s13 = sshll.u32 %s1732_s24, 5  ;;  %s372_s16 = scalar_lea.vmem %s1721_s2, %s1732_s24  ;;  %vm428_vm1 = vcmask 64512  }
   0xe   : > { %v1594_v4 = vshrl.u32 %v415_v0, 7  ;;  %513 = vperm.xlu1 %1497, %v1456_v2   ;;  %505 = vperm.xlu0 %1496, %v1454_v3   ;;  %s361_s19 = scalar_lea.vmem %s1719_s0, %s1464_s13  ;;  %s369_s22 = scalar_lea.vmem %s1720_s1, %s1464_s13  ;;  %v408_v8 = vld [vmem:[%s372_s16] sm:$0x1]  ;;  %v1459_v9 = vld [vmem:[%s1723_s4 + $0x1] ss:$0 sm:$0xff]  ;;  %vm892_vm5 = vcmask 31744  }
   0xf   : > { %v1458_v10 = vld [vmem:[%s1723_s4] ss:$0 sm:$0xff]  ;;  %v1624_v12 = vld [vmem:[%s361_s19 + $0x8] sm:$0xff]  ;;  %v1626_v13 = vld [vmem:[%s361_s19 + $0x10] sm:$0xff]  ;;  %vm409_vm0 = vcmp.gt.f32.partialorder %v408_v8, 0.5  ;;  %s1451_s12 = sshll.u32 %s1732_s24, 3 }
  0x10   : > { %v417_v7 = vsub.s32 0, %v1594_v4  ;;  %v1622_v11 = vld [vmem:[%s361_s19] sm:$0xff]  ;;  %v1628_v14 = vld [vmem:[%s361_s19 + $0x18] sm:$0xff]  ;;  %v405_v16 = vld [vmem:[%s369_s22 + $0x8] sm:$0xff]  ;;  %v414_v17 = vsel %vm409_vm0, 1, %v1526_v1  ;;  %s399_s15 = scalar_lea.vmem %s1726_s7, %s1451_s12  ;;  %s1466_s16 = sshll.u32 %s1732_s24, 6 }
  0x11   : > { %v404_v15 = vld [vmem:[%s369_s22] sm:$0xff]  ;;  %v406_v18 = vld [vmem:[%s369_s22 + $0x10] sm:$0xff]  ;;  %v407_v19 = vld [vmem:[%s369_s22 + $0x18] sm:$0xff]  ;;  %v411_v21 = vsub.f32 %v1624_v12, %v405_v16  ;;  %v1527_v47 = vmov 1983009808   ;;  %v568_v1 = vcombine.low %v1622_v11, %v1626_v13  ;;  %v584_v2 = vcombine.low %v1624_v12, %v1628_v14  ;;  %s381_s19 = scalar_lea.vmem %s1724_s5, %s1466_s16  ;;  %s391_s21 = scalar_lea.vmem %s1725_s6, %s1466_s16 }
  0x12   : > { %517 = vperm.xlu1 %1497, %v1457_v5   ;;  %509 = vperm.xlu0 %1496, %v1455_v6   ;;  %v410_v20 = vsub.f32 %v1622_v11, %v404_v15  ;;  %v418_v22 = vrot.slane %v414_v17, %v417_v7  ;;  %v412_v23 = vsub.f32 %v1626_v13, %v406_v18  ;;  %v1461_v25 = vld [vmem:[%s1723_s4 + $0x3] ss:$0 sm:$0xff]  ;;  %v1460_v30 = vld [vmem:[%s1723_s4 + $0x2] ss:$0 sm:$0xff]  ;;  %v571_v48 = vunpack.c.l.s4 %v1527_v47 }
  0x13   : > { %v413_v24 = vsub.f32 %v1628_v14, %v407_v19  ;;  %v1528_v63 = vmov 1934713408  }
  0x14   : > { %vm419_vm2 = vcmp.eq.s32.totalorder %v418_v22, 1  ;;  %v572_v53 = vunpack.c.0.s8 %v571_v48  ;;  %v603_v0 = vunpack.c.l.s4 %v1528_v63 }
  0x15   : > { %v420_v26 = vsel %vm419_vm2, 0.0, %v410_v20  ;;  %v421_v27 = vsel %vm419_vm2, 0.0, %v411_v21  ;;  %v422_v28 = vsel %vm419_vm2, 0.0, %v412_v23  ;;  %v423_v29 = vsel %vm419_vm2, 0.0, %v413_v24 }
  0x16   : > { %553 = vperm.xlu1 %1497, %v1459_v9   ;;  %549 = vperm.xlu0 %1496, %v1458_v10   ;;  %v424_v31 = vmul.f32 %v420_v26, %v420_v26  ;;  %v425_v32 = vmul.f32 %v421_v27, %v421_v27  ;;  %v426_v33 = vmul.f32 %v422_v28, %v422_v28  ;;  %v449_v35 = vsel %vm428_vm1, %v420_v26, 0.0 }
  0x17   : > { %v427_v34 = vmul.f32 %v423_v29, %v423_v29  ;;  %v450_v36 = vsel %vm428_vm1, %v421_v27, 0.0  ;;  %v452_v37 = vsel %vm428_vm1, %v422_v28, 0.0  ;;  %v454_v38 = vsel %vm428_vm1, %v423_v29, 0.0 }
  0x18   : > { %v429_v39 = vsel %vm428_vm1, %v424_v31, 0.0  ;;  %v430_v40 = vsel %vm428_vm1, %v425_v32, 0.0  ;;  %v432_v41 = vsel %vm428_vm1, %v426_v33, 0.0  ;;  %v451_v43 = vadd.f32 %v450_v36, %v449_v35 }
  0x19   : > { %v431_v42 = vadd.f32 %v430_v40, %v429_v39  ;;  %v434_v44 = vsel %vm428_vm1, %v427_v34, 0.0  ;;  %v1649_v62 = vsub.s32 %v572_v53, %v1594_v4  ;;  %v604_v10 = vunpack.c.0.s8 %v603_v0 }
  0x1a   : > { %561 = vperm.xlu1 %1497, %v1461_v25   ;;  %557 = vperm.xlu0 %1496, %v1460_v30   ;;  %v453_v46 = vadd.f32 %v452_v37, %v451_v43 }
  0x1b   : > { %v433_v45 = vadd.f32 %v432_v41, %v431_v42  ;;  %v576_v15 = vrot.slane %v568_v1, %v1649_v62  ;;  %v592_v16 = vrot.slane %v584_v2, %v1649_v62  ;;  %v1662_v20 = vsub.s32 %v604_v10, %v1594_v4 }
  0x1c   : > { %v455_v50 = vadd.f32 %v454_v38, %v453_v46 }
  0x1d   : > { %v435_v49 = vadd.f32 %v434_v44, %v433_v45  ;;  %v600_v22 = vcombine.low %v576_v15, %v592_v16  ;;  %v601_v30 = vcombine.high %v576_v15, %v592_v16 }
  0x1e   : > { %v457_v52 = vmul.f32 0.25, %v455_v50 }
  0x1f   : > { %v436_v51 = vadd.f32 1e-10, %v435_v49  ;;  %v615_v34 = vrot.slane %v601_v30, %v1662_v20 }
  0x20   : > { %v458_v54 = vsub.f32 %v420_v26, %v457_v52  ;;  %v459_v55 = vsub.f32 %v421_v27, %v457_v52  ;;  %v461_v56 = vsub.f32 %v423_v29, %v457_v52  ;;  %v460_v57 = vsub.f32 %v422_v28, %v457_v52 }
  0x21   : > { %1498 = vrsqrt.f32 %v436_v51  ;;  %vm439_vm3 = vcmp.eq.f32.partialorder %v436_v51, inf  ;;  %v442_v21 = vand.u32 2147483648, %v436_v51  ;;  %vm441_vm4 = vcmp.eq.f32.partialorder %v436_v51, 0.0 }
  0x22   : > { %v462_v58 = vmul.f32 %v458_v54, %v458_v54  ;;  %v463_v59 = vmul.f32 %v459_v55, %v459_v55  ;;  %v465_v60 = vmul.f32 %v461_v56, %v461_v56  ;;  %v464_v61 = vmul.f32 %v460_v57, %v460_v57 }
  0x23   : > { %v569_v26 = vcombine.high %v1622_v11, %v1626_v13  ;;  %v585_v27 = vcombine.high %v1624_v12, %v1628_v14  ;;  %v608_v29 = vrot.slane %v600_v22, %v1662_v20  ;;  %v1529_v13 = vmov 0.0  }
  0x24   : > { %v466_v3 = vsel %vm428_vm1, %v462_v58, 0.0  ;;  %v467_v5 = vsel %vm428_vm1, %v463_v59, 0.0  ;;  %v469_v6 = vsel %vm428_vm1, %v464_v61, 0.0  ;;  %v471_v7 = vsel %vm428_vm1, %v465_v60, 0.0 }
  0x25   : > { %v468_v8 = vadd.f32 %v467_v5, %v466_v3  ;;  %v583_v32 = vrot.slane %v569_v26, %v1649_v62  ;;  %v599_v33 = vrot.slane %v585_v27, %v1649_v62  ;;  %v633_v14 = vcombine.high %v615_v34, %v1529_v13 }
  0x26   : > { %v632_v36 = vcombine.high %v608_v29, %v1529_v13 }
  0x27   : > { %v470_v9 = vadd.f32 %v469_v6, %v468_v8  ;;  %v616_v12 = vcombine.low %v583_v32, %v599_v33  ;;  %v617_v38 = vcombine.high %v583_v32, %v599_v33 }
  0x29   : > { %v472_v17 = vadd.f32 %v471_v7, %v470_v9  ;;  %v624_v37 = vrot.slane %v616_v12, %v1662_v20  ;;  %v631_v45 = vrot.slane %v617_v38, %v1662_v20 }
  0x2b   : > { %v473_v18 = vmul.f32 0.25, %v472_v17  ;;  %v634_v44 = vcombine.high %v624_v37, %v1529_v13  ;;  %v635_v46 = vcombine.high %v631_v45, %v1529_v13 }
  0x2d   : > { %v474_v24 = vadd.f32 1e-05, %v473_v18 }
  0x2e   : > { %v1499_v19 = vpop.eup %1498 }
  0x2f   : > { %v438_v23 = vmul.f32 %v1499_v19, %v436_v51  ;;  %1500 = vrsqrt.f32 %v474_v24 }
  0x31   : > { %v440_v25 = vsel %vm439_vm3, %v436_v51, %v438_v23 }
  0x32   : > { %v443_v28 = vsel %vm441_vm4, %v442_v21, %v440_v25 }
  0x33   : > { %v1452_v4 = vadd.f32 -2.0, %v443_v28 }
  0x35   : > { %v445_v31 = vand.u32 2147483647, %v1452_v4 }
  0x37   : > { %v1453_v35 = vadd.f32 -1.0, %v445_v31 }
  0x38   : > { %636 = vxpose.xlu0.b32.start.end [1/1] (short) (narrow) %v608_v29, 8 }
  0x39   : > { %v447_v11 = vmax.f32 %v1453_v35, 0.0 }
  0x3b   : > { %448 = vst.msk [vmem:[%s399_s15] sm:$0xff] %vm428_vm1, %v447_v11 }
  0x3c   : > { %700 = vxpose.xlu0.b32.start.end [1/1] (short) (narrow) %v615_v34, 8  ;;  %v1501_v39 = vpop.eup %1500 }
  0x3d   : > { %v478_v40 = vmul.f32 %v1501_v39, %v460_v57  ;;  %v476_v41 = vmul.f32 %v1501_v39, %v458_v54  ;;  %v479_v42 = vmul.f32 %v1501_v39, %v461_v56  ;;  %v477_v43 = vmul.f32 %v1501_v39, %v459_v55 }
  0x40   : > { %732 = vxpose.xlu0.b32.start.end [1/1] (short) (narrow) %v633_v14, 8 }
  0x43   : > { %668 = vxpose.xlu1.b32.start.end [1/1] (short) (narrow) %v632_v36, 8 }
  0x44   : > { %764 = vxpose.xlu0.b32.start.end [1/1] (short) (narrow) %v624_v37, 8 }
  0x47   : > { %796 = vxpose.xlu1.b32.start.end [1/1] (short) (narrow) %v634_v44, 8 }
  0x48   : > { %828 = vxpose.xlu0.b32.start.end [1/1] (short) (narrow) %v631_v45, 8 }
  0x4b   : > { %860 = vxpose.xlu1.b32.start.end [1/1] (short) (narrow) %v635_v46, 8 }
  0x89   : > { %v514_v47 = vpop.permute.xlu1 %513  ;;  %v506_v48 = vpop.permute.xlu0 %505 }
  0x8a   : > { %v522_v53 = vmul.f32 %v514_v47, %v478_v40  ;;  %v520_v57 = vmul.f32 %v506_v48, %v476_v41 }
  0x8d   : > { %v518_v49 = vpop.permute.xlu1 %517  ;;  %v510_v50 = vpop.permute.xlu0 %509 }
  0x8e   : > { %v523_v54 = vmul.f32 %v518_v49, %v479_v42  ;;  %v521_v56 = vmul.f32 %v510_v50, %v477_v43 }
  0x91   : > { %v554_v51 = vpop.permute.xlu1 %553  ;;  %v550_v52 = vpop.permute.xlu0 %549 }
  0x92   : > { %v565_v59 = vadd.f32 %v554_v51, %v521_v56  ;;  %v564_v60 = vadd.f32 %v550_v52, %v520_v57 }
  0x95   : > { %v562_v55 = vpop.permute.xlu1 %561  ;;  %v558_v58 = vpop.permute.xlu0 %557 }
  0x96   : > { %v567_v61 = vadd.f32 %v562_v55, %v523_v54  ;;  %v566_v63 = vadd.f32 %v558_v58, %v522_v53 }
  0x98   : > { %v917_v0 = vcombine.low %v565_v59, %v567_v61  ;;  %v918_v1 = vcombine.high %v565_v59, %v567_v61  ;;  %v901_v2 = vcombine.low %v564_v60, %v566_v63  ;;  %v902_v3 = vcombine.high %v564_v60, %v566_v63 }
  0x9a   : > { %v925_v5 = vrot.slane %v917_v0, %v1649_v62  ;;  %v932_v6 = vrot.slane %v918_v1, %v1649_v62  ;;  %v909_v7 = vrot.slane %v901_v2, %v1649_v62  ;;  %v916_v8 = vrot.slane %v902_v3, %v1649_v62 }
  0x9c   : > { %v933_v9 = vcombine.low %v909_v7, %v925_v5  ;;  %v934_v10 = vcombine.high %v909_v7, %v925_v5  ;;  %v949_v15 = vcombine.low %v916_v8, %v932_v6  ;;  %v950_v16 = vcombine.high %v916_v8, %v932_v6 }
  0x9e   : > { %v941_v17 = vrot.slane %v933_v9, %v1662_v20  ;;  %v948_v19 = vrot.slane %v934_v10, %v1662_v20  ;;  %v957_v22 = vrot.slane %v949_v15, %v1662_v20  ;;  %v964_v62 = vrot.slane %v950_v16, %v1662_v20 }
  0xa0   : > { %969 = vxpose.xlu0.b32.start.end [1/1] (short) (narrow) %v941_v17, 8  ;;  %v965_v18 = vcombine.high %v941_v17, %v1529_v13  ;;  %v966_v21 = vcombine.high %v948_v19, %v1529_v13  ;;  %v967_v23 = vcombine.high %v957_v22, %v1529_v13  ;;  %v968_v24 = vcombine.high %v964_v62, %v1529_v13 }
  0xa2   : > { %1001 = vxpose.xlu1.b32.start.end [1/1] (short) (narrow) %v965_v18, 8 }
  0xa4   : > { %1033 = vxpose.xlu0.b32.start.end [1/1] (short) (narrow) %v948_v19, 8 }
  0xa6   : > { %1065 = vxpose.xlu1.b32.start.end [1/1] (short) (narrow) %v966_v21, 8 }
  0xa8   : > { %1097 = vxpose.xlu0.b32.start.end [1/1] (short) (narrow) %v957_v22, 8 }
  0xaa   : > { %1129 = vxpose.xlu1.b32.start.end [1/1] (short) (narrow) %v967_v23, 8 }
  0xac   : > { %1161 = vxpose.xlu0.b32.start.end [1/1] (short) (narrow) %v964_v62, 8 }
  0xae   : > { %1193 = vxpose.xlu1.b32.start.end [1/1] (short) (narrow) %v968_v24, 8 }
  0xb4   : > { %v652_v25 = vpop.trf.xlu0 }
  0xb5   : > { %893 = vst.msk [vmem:[%s381_s19] sm:$0xff] %vm892_vm5, %v652_v25 }
  0xb8   : > { %v716_v26 = vpop.trf.xlu0 }
  0xb9   : > { %895 = vst.msk [vmem:[%s381_s19 + $0x10] sm:$0xff] %vm892_vm5, %v716_v26 }
  0xbc   : > { %v748_v27 = vpop.trf.xlu0 }
  0xbd   : > { %896 = vst.msk [vmem:[%s381_s19 + $0x18] sm:$0xff] %vm892_vm5, %v748_v27 }
  0xbf   : > { %v684_v20 = vpop.trf.xlu1 }
  0xc0   : > { %894 = vst.msk [vmem:[%s381_s19 + $0x8] sm:$0xff] %vm892_vm5, %v684_v20  ;;  %v780_v28 = vpop.trf.xlu0 }
  0xc1   : > { %897 = vst.msk [vmem:[%s381_s19 + $0x20] sm:$0xff] %vm892_vm5, %v780_v28 }
  0xc3   : > { %v812_v29 = vpop.trf.xlu1 }
  0xc4   : > { %898 = vst.msk [vmem:[%s381_s19 + $0x28] sm:$0xff] %vm892_vm5, %v812_v29  ;;  %v844_v30 = vpop.trf.xlu0 }
  0xc5   : > { %899 = vst.msk [vmem:[%s381_s19 + $0x30] sm:$0xff] %vm892_vm5, %v844_v30 }
  0xc7   : > { %v876_v4 = vpop.trf.xlu1 }
  0xc8   : > { %900 = vst.msk [vmem:[%s381_s19 + $0x38] sm:$0xff] %vm892_vm5, %v876_v4 }
 0x11c   : > { %v985_v31 = vpop.trf.xlu0 }
 0x11d   : > { %1225 = vst.msk [vmem:[%s391_s21] sm:$0xff] %vm892_vm5, %v985_v31 }
 0x11e   : > { %v1017_v32 = vpop.trf.xlu1 }
 0x11f   : > { %1226 = vst.msk [vmem:[%s391_s21 + $0x8] sm:$0xff] %vm892_vm5, %v1017_v32 }
 0x120   : > { %v1049_v33 = vpop.trf.xlu0 }
 0x121   : > { %1227 = vst.msk [vmem:[%s391_s21 + $0x10] sm:$0xff] %vm892_vm5, %v1049_v33 }
 0x122   : > { %v1081_v34 = vpop.trf.xlu1 }
 0x123   : > { %1228 = vst.msk [vmem:[%s391_s21 + $0x18] sm:$0xff] %vm892_vm5, %v1081_v34 }
 0x124   : > { %v1113_v35 = vpop.trf.xlu0 }
 0x125   : > { %1229 = vst.msk [vmem:[%s391_s21 + $0x20] sm:$0xff] %vm892_vm5, %v1113_v35 }
 0x126   : > { %v1145_v11 = vpop.trf.xlu1 }
 0x127   : > { %1230 = vst.msk [vmem:[%s391_s21 + $0x28] sm:$0xff] %vm892_vm5, %v1145_v11 }
 0x128   : > { %v1177_v12 = vpop.trf.xlu0 }
 0x129   : > { %1231 = vst.msk [vmem:[%s391_s21 + $0x30] sm:$0xff] %vm892_vm5, %v1177_v12 }
 0x12a   : > { %v1209_v13 = vpop.trf.xlu1 }
 0x12b   : > { %1232 = vst.msk [vmem:[%s391_s21 + $0x38] sm:$0xff] %vm892_vm5, %v1209_v13 }
 0x12c PF: > { %s18_s26 = sadd.s32 1, %s1524_s26   ;;  %s1727_s24 = smov %s1520_s25 }
 0x12d   : > { %p15_p5 = scmp.ge.s32.totalorder %s18_s26, 4   ;;  %s1728_s25 = smov %s1730_s27 }
 0x12f   :  { %17 = sbr.rel (!%p15_p5) target bundleno = 2 (0x2), region = 100 }

// kernel: transformer_encoder_with_pair.8
= control target key start
LH: loop header
LB: loop body
LE: loop exit
PB: predicated region body
PF: predicated region fallthrough
CT: control target
= control target key end

     0   :  { %vm20_vm0 = vcmask 261120   ;;  %s188_s0 = inlined_call_operand.vmem [shape: f32[16,32], index: 0, kind: input, shape index: {}]   ;;  %s189_s1 = inlined_call_operand.vmem [shape: f32[1,32], index: 1, kind: input, shape index: {}]   ;;  %s190_s2 = inlined_call_operand.vmem [shape: f32[1,32], index: 2, kind: input, shape index: {}]   ;;  %s191_s3 = inlined_call_operand.vmem [shape: f32[16,1], index: 3, kind: input, shape index: {}]   ;;  %s192_s4 = inlined_call_operand.hbm [shape: f32[16,32], index: 4, kind: output, shape index: {}]  }
   0x1   :  { %v18_v0 = vld [vmem:[%s188_s0] sm:$0xff]  ;;  %v19_v1 = vld [vmem:[%s188_s0 + $0x8] sm:$0xff] }
   0x2   :  { %9 = vsyncpa [#allocation3], 0  ;;  %v21_v2 = vsel %vm20_vm0, %v18_v0, 0.0  ;;  %v24_v3 = vsel %vm20_vm0, %v19_v1, 0.0  ;;  %v132_v4 = vmov 0   ;;  %v66_v5 = vld [vmem:[%s191_s3] sm:$0xff] }
   0x3   :  { %22 = vadd.xlane.f32.xlu0 %v21_v2  ;;  %105 = vset.pattern.permute.xlu1 %v132_v4  ;;  %v67_v16 = vld [vmem:[%s191_s3 + $0x8] sm:$0xff]  ;;  %v98_v24 = vld [vmem:[%s189_s1] ss:$0 sm:$0xff]  ;;  %s133_s3 = smov [#allocation2]  }
   0x4   :  { %104 = vset.pattern.permute.xlu0 %v132_v4  ;;  %v99_v26 = vld [vmem:[%s190_s2] ss:$0 sm:$0xff]  ;;  %s87_s26 = sshll.u32 %s133_s3, 4  ;;  %s88_s26 = int_to_ptr.vmem [resolvable:$true] %s87_s26 }
   0x5   :  { %s110_s1 = scalar_lea.vmem %s88_s26, 256  ;;  %p115_p1 = scmp.lt.s32.totalorder %s88_s26, %s88_s26 }
   0x6   :  { %p111_p0 = scmp.ne.s32.totalorder %s88_s26, %s110_s1  ;;  %p116_p2 = scmp.lt.s32.totalorder %s110_s1, %s110_s1 }
   0x7   :  { %25 = vadd.xlane.f32.xlu0 %v24_v3 }
   0x8   :  { %p117_p3 = por %p116_p2, %p115_p1 }
   0xa   :  { %p118_p4 = pnand %p117_p3, %p111_p0 }
  0x1d   :  { %70 = vperm.xlu0 %104, %v66_v5  }
  0x8c   :  { %v23_v6 = vpop.xlane.xlu0 %22 }
  0x8d   :  { %v28_v7 = vmul.f32 0.03125, %v23_v6 }
  0x8f   :  { %v30_v8 = vsub.f32 %v18_v0, %v28_v7 }
  0x90   :  { %v26_v9 = vpop.xlane.xlu0 %25 }
  0x91   :  { %v29_v10 = vmul.f32 0.03125, %v26_v9  ;;  %v32_v11 = vmul.f32 %v30_v8, %v30_v8 }
  0x93   :  { %v31_v12 = vsub.f32 %v19_v1, %v29_v10  ;;  %v34_v13 = vsel %vm20_vm0, %v32_v11, 0.0 }
  0x94   :  { %35 = vadd.xlane.f32.xlu1 %v34_v13 }
  0x95   :  { %v33_v14 = vmul.f32 %v31_v12, %v31_v12 }
  0x97   :  { %v37_v15 = vsel %vm20_vm0, %v33_v14, 0.0 }
  0x98   :  { %38 = vadd.xlane.f32.xlu1 %v37_v15  ;;  %v71_v29 = vpop.permute.xlu0 %70 }
  0xa9   :  { %75 = vperm.xlu1 %105, %v67_v16  }
 0x11d   :  { %v36_v17 = vpop.xlane.xlu1 %35 }
 0x11e   :  { %v40_v18 = vmul.f32 0.03125, %v36_v17 }
 0x120   :  { %v42_v19 = vadd.f32 1e-05, %v40_v18 }
 0x121   :  { %v39_v20 = vpop.xlane.xlu1 %38 }
 0x122   :  { %106 = vrsqrt.f32 %v42_v19  ;;  %v41_v21 = vmul.f32 0.03125, %v39_v20 }
 0x124   :  { %v43_v22 = vadd.f32 1e-05, %v41_v21 }
 0x125   :  { %v76_v34 = vpop.permute.xlu1 %75 }
 0x126   :  { %108 = vrsqrt.f32 %v43_v22 }
 0x12f   :  { %v107_v23 = vpop.eup %106 }
 0x130   :  { %v46_v25 = vmul.f32 %v107_v23, %v30_v8 }
 0x132   :  { %v55_v27 = vmul.f32 %v98_v24, %v46_v25 }
 0x133   :  { %v109_v28 = vpop.eup %108 }
 0x134   :  { %v64_v30 = vadd.f32 %v99_v26, %v55_v27  ;;  %v47_v31 = vmul.f32 %v109_v28, %v31_v12 }
 0x136   :  { %v78_v32 = vmul.f32 %v71_v29, %v64_v30  ;;  %v56_v33 = vmul.f32 %v98_v24, %v47_v31 }
 0x138   :  { %80 = vst.msk [vmem:[#allocation2] sm:$0xff] %vm20_vm0, %v78_v32  ;;  %v65_v35 = vadd.f32 %v99_v26, %v56_v33 }
 0x13a   :  { %v79_v36 = vmul.f32 %v76_v34, %v65_v35 }
 0x13c   :  { %81 = vst.msk [vmem:[#allocation2 + $0x8] sm:$0xff] %vm20_vm0, %v79_v36 }
 0x13d   :  { %121 = shalt.err (!%p118_p4)
}
 0x13e   :  { %s134_s2 = smov 128   ;;  %s135_s27 = smov 8  }
 0x13f   :  { %93 = dma.vmem_to_hbm [thread:$0]  %s88_s26, 256, %s192_s4, [#allocation3], %s134_s2, %s134_s2, %s135_s27  }
 0x140   :  { %130 = dma.done.wait [#allocation3], 256  }
 0x141   :  { %131 = vsyncadd [#allocation3], 4294967040 }
 0x142   :  { %97 = vsyncpa [#allocation3], 1 }

// kernel: transformer_encoder_with_pair.6
= control target key start
LH: loop header
LB: loop body
LE: loop exit
PB: predicated region body
PF: predicated region fallthrough
CT: control target
= control target key end

     0   :  { %s2776_s18 = smov 0   ;;  %s2778_s19 = smov 0   ;;  %s3100_s0 = inlined_call_operand.vmem [shape: f32[2,8,32], index: 0, kind: input, shape index: {}]   ;;  %s3101_s1 = inlined_call_operand.vmem [shape: f32[2,4,8,8], index: 1, kind: input, shape index: {}]   ;;  %s3102_s2 = inlined_call_operand.vmem [shape: f32[1,32], index: 2, kind: input, shape index: {}]   ;;  %s3103_s3 = inlined_call_operand.vmem [shape: f32[1,32], index: 3, kind: input, shape index: {}]   ;;  %s3104_s4 = inlined_call_operand.vmem [shape: bf16[3,32,32], index: 4, kind: input, shape index: {}]   ;;  %s3105_s5 = inlined_call_operand.vmem [shape: f32[3,32], index: 5, kind: input, shape index: {}]   ;;  %s3106_s6 = inlined_call_operand.vmem [shape: bf16[32,32], index: 6, kind: input, shape index: {}]   ;;  %s3107_s7 = inlined_call_operand.vmem [shape: f32[1,32], index: 7, kind: input, shape index: {}]   ;;  %s3108_s8 = inlined_call_operand.vmem [shape: f32[1,32], index: 8, kind: input, shape index: {}]   ;;  %s3109_s9 = inlined_call_operand.vmem [shape: f32[1,32], index: 9, kind: input, shape index: {}]   ;;  %s3110_s10 = inlined_call_operand.vmem [shape: bf16[32,64], index: 10, kind: input, shape index: {}]   ;;  %s3111_s11 = inlined_call_operand.vmem [shape: f32[1,64], index: 11, kind: input, shape index: {}]   ;;  %s3112_s12 = inlined_call_operand.vmem [shape: bf16[64,32], index: 12, kind: input, shape index: {}]   ;;  %s3113_s13 = inlined_call_operand.vmem [shape: f32[1,32], index: 13, kind: input, shape index: {}]   ;;  %s3114_s14 = inlined_call_operand.vmem [shape: f32[2,8,32], index: 14, kind: output, shape index: {0}]   ;;  %s3115_s15 = inlined_call_operand.vmem [shape: f32[2,4,8,8], index: 15, kind: output, shape index: {1}]  }
   0x1   :  { %s2780_s20 = smov 0  }
   0x2 LB: > { %s38_s21 = sadd.s32 1, %s2679_s19  ;;  %p2395_p0 = scmp.ge.s32.totalorder %s2683_s20, 1  ;;  %s2683_s20 = sphi %s2780_s20, %s26_s20   ;;  %s2679_s19 = sphi %s2778_s19, %s3117_s19   ;;  %s2675_s18 = sphi %s2776_s18, %s3116_s18  }
   0x3   : > { %p40_p1 = scmp.ge.s32.totalorder %s38_s21, 2  ;;  %p499_p2 = scmp.lt.s32.totalorder %s2683_s20, 3 }
   0x5   : > { %s3119_s21 = smov (%p40_p1, %s38_s21), 0  ;;  %p500_p3 = pnand %p2395_p0, %p499_p2 }
   0x6   : > { %p576_p4 = scmp.lt.s32.totalorder (!%p500_p3), %s2675_s18, 1  ;;  %s2687_s26 = smov (!%p500_p3), 104  }
   0x7   : > { %503 = sbr.rel (%p500_p3) target bundleno = 2519 (0x9d7), region = 76  ;;  %s2688_s27 = smov (!%p500_p3), 120  }
   0x8   : > { %s2689_s28 = smov (!%p500_p3), 112   ;;  %s2694_s23 = smov (!%p500_p3), 8  }
   0x9   : > { %s2695_s24 = smov (!%p500_p3), 24  }
   0xc   : > { %s3121_s18 = smov (!%p576_p4, %s2675_s18), 1  ;;  %vm624_vm0 = vcmask 261120   ;;  %v2625_v7 = vld [vmem:[%s3104_s4 + $0x8] sm:$0xff]   ;;  %v2626_v8 = vld [vmem:[%s3104_s4 + $0x18] sm:$0xff]   ;;  %v2685_v9 = vmov 0.0   ;;  %v2627_v10 = vld [vmem:[%s3104_s4] sm:$0xff]   ;;  %v861_v46 = vlaneseq }
   0xd   : > { %s2396_s22 = sshll.u32 %s3121_s18, 3  ;;  %2490 = vmatprep.subr.bf16.mxu0 %v2685_v9  ;;  %658 = vst.msk [vmem:[#allocation3] sm:$0xff] %vm624_vm0, %v2685_v9  ;;  %2498 = vmatprep.subr.bf16.mxu1 %v2685_v9  ;;  %v2628_v11 = vld [vmem:[%s3104_s4 + $0x10] sm:$0xff]   ;;  %vm2686_vm1 = vmmov 0   ;;  %v2402_v16 = vld [vmem:[%s3102_s2] ss:$0 sm:$0xff] }
   0xe   : > { %s579_s25 = scalar_lea.vmem %s3100_s0, %s2396_s22  ;;  %2491 = vmatpush3.bf16.msra.mxu0 %v2625_v7  ;;  %2499 = vmatpush3.bf16.msra.mxu1 %v2626_v8  ;;  %v2403_v18 = vld [vmem:[%s3103_s3] ss:$0 sm:$0xff]  ;;  %vm656_vm2 = vcmask 257024   ;;  %v2629_v22 = vld [vmem:[%s3104_s4 + $0x28] sm:$0xff]   ;;  %v2412_v25 = vld [vmem:[%s3105_s5 + $0x1] ss:$0 sm:$0xff] }
   0xf   : > { %v2802_v0 = vld [vmem:[%s579_s25] sm:$0xff]  ;;  %2492 = vmatprep.subr.bf16.mxu0 %v2685_v9  ;;  %2500 = vmatprep.subr.bf16.mxu1 %v2685_v9  ;;  %v2690_v44 = vmov 1983009808   ;;  %v2691_v47 = vmov 1934713408   ;;  %v862_v50 = vshrl.u32 %v861_v46, 7 }
  0x10   : > { %v625_v1 = vsel %vm624_vm0, %v2802_v0, 0.0  ;;  %2494 = vmatprep.mubr.msk.bf16.mxu0 %vm2686_vm1, %v2685_v9  ;;  %2502 = vmatprep.mubr.msk.bf16.mxu1 %vm2686_vm1, %v2685_v9  ;;  %v2630_v24 = vld [vmem:[%s3104_s4 + $0x20] sm:$0xff]   ;;  %v859_v45 = vunpack.c.l.s4 %v2690_v44  ;;  %v876_v48 = vunpack.c.l.s4 %v2691_v47  ;;  %vm1361_vm3 = vcmask 64512   ;;  %s2452_s29 = sshll.u32 %s3121_s18, 5 }
  0x11   : > { %626 = vadd.xlane.f32.xlu0 %v625_v1  ;;  %v2404_v26 = vld [vmem:[%s3105_s5] ss:$0 sm:$0xff]  ;;  %s588_s17 = scalar_lea.vmem %s3101_s1, %s2452_s29  ;;  %s616_s25 = scalar_lea.vmem %s3115_s15, %s2452_s29  ;;  %vm1613_vm6 = vcmask 1043456   ;;  %vm1944_vm9 = vcmask 130048   ;;  %vm1946_vm10 = vcmask 195584   ;;  %vm2167_vm11 = vcmask 523264  }
  0x12   : > { %2493 = vmatpush3.bf16.msra.mxu0 %v2627_v10  ;;  %2501 = vmatpush3.bf16.msra.mxu1 %v2628_v11  ;;  %v860_v49 = vunpack.c.0.s8 %v859_v45  ;;  %v877_v51 = vunpack.c.0.s8 %v876_v48 }
  0x13   : > { %2506 = vmatprep.subr.bf16.mxu0 %v2685_v9  ;;  %2514 = vmatprep.subr.bf16.mxu1 %v2685_v9 }
  0x14   : > { %v2869_v52 = vsub.s32 %v860_v49, %v862_v50  ;;  %v2872_v56 = vsub.s32 %v877_v51, %v862_v50 }
  0x9a   : > { %v627_v2 = vpop.xlane.xlu0 %626 }
  0x9b   : > { %v629_v3 = vmul.f32 0.03125, %v627_v2  ;;  %v2692_v2 = vmov 0  }
  0x9d   : > { %v630_v4 = vsub.f32 %v2802_v0, %v629_v3 }
  0x9f   : > { %v631_v5 = vmul.f32 %v630_v4, %v630_v4 }
  0xa1   : > { %v632_v6 = vsel %vm624_vm0, %v631_v5, 0.0 }
  0xa2   : > { %633 = vadd.xlane.f32.xlu0 %v632_v6 }
 0x12b   : > { %v634_v12 = vpop.xlane.xlu0 %633 }
 0x12c   : > { %v635_v13 = vmul.f32 0.03125, %v634_v12 }
 0x12e   : > { %v636_v14 = vadd.f32 1e-05, %v635_v13 }
 0x130   : > { %2639 = vrsqrt.f32 %v636_v14 }
 0x13d   : > { %v2640_v15 = vpop.eup %2639 }
 0x13e   : > { %v638_v17 = vmul.f32 %v2640_v15, %v630_v4 }
 0x140   : > { %v646_v19 = vmul.f32 %v2402_v16, %v638_v17 }
 0x142   : > { %v654_v20 = vadd.f32 %v2403_v18, %v646_v19 }
 0x144   : > { %v655_v21 = vpack.c.bf16 %v654_v20, %v654_v20 }
 0x146   : > { %657 = vst.msk [vmem:[#allocation2] sm:$0xf] %vm656_vm2, %v655_v21 }
 0x14d   : > { %v659_v23 = vld [vmem:[#allocation2] sm:$0xf] }
 0x14e   : > { %2495 = vmatmul.mubr.msk.bf16.vlgmr.msra.gmra.mxu0 %vm624_vm0, %v659_v23  ;;  %2503 = vmatmul.mubr.msk.bf16.vlgmr.msra.gmra.mxu1 %vm624_vm0, %v659_v23 }
 0x14f   : > { %2507 = vmatpush3.bf16.msra.mxu0 %v2629_v22  ;;  %2510 = vmatprep.mubr.msk.bf16.mxu0 %vm2686_vm1, %v2685_v9 }
 0x150   : > { %2508 = vmatprep.subr.bf16.mxu0 %v2685_v9  ;;  %2516 = vmatprep.mubr.msk.bf16.mxu1 %vm2686_vm1, %v2685_v9 }
 0x153   : > { %2509 = vmatpush3.bf16.msra.mxu0 %v2630_v24 }
 0x154   : > { %2520 = vmatprep.subr.bf16.mxu0 %v2685_v9 }
 0x156   : > { %2511 = vmatmul.mubr.msk.bf16.vlgmr.msra.gmra.mxu0 %vm624_vm0, %v659_v23 }
 0x157   : > { %2522 = vmatprep.mubr.msk.bf16.mxu0 %vm2686_vm1, %v2685_v9 }
 0x20e   : > { %v719_v27 = vpop.f32.mrf.mxu0  ;;  %v782_v28 = vpop.f32.mrf.mxu1 }
 0x20f   : > { %v783_v29 = vadd.f32 %v2412_v25, %v782_v28  ;;  %v720_v32 = vadd.f32 %v2404_v26, %v719_v27 }
 0x210   : > { %v2496_v30 = vpop.f32.mrf.mxu0  ;;  %v2504_v31 = vpop.f32.mrf.mxu1 }
 0x211   : > { %v1019_v33 = vpack.c.bf16 %v783_v29, %v783_v29  ;;  %v725_v38 = vmul.f32 0.35355338, %v720_v32 }
 0x212   : > { %v722_v34 = vpop.f32.mrf.mxu0  ;;  %v785_v35 = vpop.f32.mrf.mxu1 }
 0x213   : > { %1025 = vrot.lane.b32.xlu0 %v1019_v33, %s2687_s26  ;;  %1021 = vrot.lane.b32.xlu1 %v1019_v33, %s2688_s27  ;;  %v850_v41 = vpack.c.bf16 %v725_v38, %v725_v38  ;;  %v1033_v1 = vrot.slane %v1019_v33, %v2869_v52 }
 0x214   : > { %v2497_v36 = vpop.f32.mrf.mxu0  ;;  %v2505_v37 = vpop.f32.mrf.mxu1 }
 0x215   : > { %v864_v14 = vrot.slane %v850_v41, %v2869_v52 }
 0x216   : > { %v2863_v39 = vpop.f32.mrf.mxu0 }
 0x217   : > { %1023 = vrot.lane.b32.xlu1 %v1019_v33, %s2689_s28 }
 0x218   : > { %v2512_v40 = vpop.f32.mrf.mxu0 }
 0x21a   : > { %v847_v42 = vpop.f32.mrf.mxu0 }
 0x21b   : > { %852 = vrot.lane.b32.xlu1 %v850_v41, %s2688_s27 }
 0x21c   : > { %v2513_v43 = vpop.f32.mrf.mxu0 }
 0x21f   : > { %854 = vrot.lane.b32.xlu1 %v850_v41, %s2689_s28 }
 0x223   : > { %856 = vrot.lane.b32.xlu1 %v850_v41, %s2687_s26 }
 0x285   : > { %v1026_v53 = vpop.permute.xlu0 %1025  ;;  %v1022_v54 = vpop.permute.xlu1 %1021 }
 0x286   : > { %v1075_v55 = vrot.slane %v1026_v53, %v2869_v52  ;;  %v1067_v57 = vrot.slane %v1022_v54, %v2869_v52 }
 0x288   : > { %v1076_v58 = vcombine.low %v1067_v57, %v1075_v55  ;;  %v1077_v59 = vcombine.high %v1067_v57, %v1075_v55 }
 0x289   : > { %v1024_v60 = vpop.permute.xlu1 %1023 }
 0x28a   : > { %v1084_v61 = vrot.slane %v1076_v58, %v2872_v56  ;;  %v1091_v62 = vrot.slane %v1077_v59, %v2872_v56  ;;  %v1041_v63 = vrot.slane %v1024_v60, %v2869_v52 }
 0x28c   : > { %v1092_v3 = vcombine.high %v1084_v61, %v2692_v2  ;;  %v1042_v4 = vcombine.low %v1033_v1, %v1041_v63  ;;  %v1043_v5 = vcombine.high %v1033_v1, %v1041_v63  ;;  %v1093_v7 = vcombine.high %v1091_v62, %v2692_v2 }
 0x28d   : > { %v853_v6 = vpop.permute.xlu1 %852  ;;  %v1099_v11 = vshrl.u32 %v1084_v61, 16  ;;  %v1115_v13 = vshrl.u32 %v1091_v62, 16 }
 0x28e   : > { %v1050_v8 = vrot.slane %v1042_v4, %v2872_v56  ;;  %v1057_v10 = vrot.slane %v1043_v5, %v2872_v56  ;;  %v1107_v12 = vshrl.u32 %v1092_v3, 16  ;;  %v1123_v20 = vshrl.u32 %v1093_v7, 16 }
 0x28f   : > { %v898_v40 = vrot.slane %v853_v6, %v2869_v52 }
 0x290   : > { %v1058_v15 = vcombine.high %v1050_v8, %v2692_v2  ;;  %v1059_v16 = vcombine.high %v1057_v10, %v2692_v2  ;;  %v1096_v17 = vpack.i.b16 %v1084_v61, %v1050_v8  ;;  %v1098_v18 = vshrl.u32 %v1050_v8, 16 }
 0x291   : > { %v855_v19 = vpop.permute.xlu1 %854  ;;  %v1112_v21 = vpack.i.b16 %v1091_v62, %v1057_v10  ;;  %v1114_v22 = vshrl.u32 %v1057_v10, 16 }
 0x292   : > { %v872_v23 = vrot.slane %v855_v19, %v2869_v52  ;;  %v1100_v24 = vpack.i.b16 %v1099_v11, %v1098_v18  ;;  %v1104_v25 = vpack.i.b16 %v1092_v3, %v1058_v15  ;;  %v1106_v26 = vshrl.u32 %v1058_v15, 16 }
 0x293   : > { %v1120_v27 = vpack.i.b16 %v1093_v7, %v1059_v16  ;;  %v1116_v28 = vpack.i.b16 %v1115_v13, %v1114_v22  ;;  %v1122_v29 = vshrl.u32 %v1059_v16, 16  ;;  %v1126_v30 = vcombine.low %v1096_v17, %v1112_v21 }
 0x294   : > { %v873_v31 = vcombine.low %v864_v14, %v872_v23  ;;  %v1108_v32 = vpack.i.b16 %v1107_v12, %v1106_v26  ;;  %v874_v34 = vcombine.high %v864_v14, %v872_v23 }
 0x295   : > { %v1134_v33 = vcombine.low %v1104_v25, %v1120_v27  ;;  %v857_v35 = vpop.permute.xlu1 %856  ;;  %v1124_v36 = vpack.i.b16 %v1123_v20, %v1122_v29  ;;  %v1151_v37 = vcombine.low %v1100_v24, %v1116_v28  ;;  %v1133_v44 = vrot.slane %v1126_v30, %v2869_v52 }
 0x296   : > { %v881_v38 = vrot.slane %v873_v31, %v2872_v56  ;;  %v888_v41 = vrot.slane %v874_v34, %v2872_v56  ;;  %v906_v42 = vrot.slane %v857_v35, %v2869_v52 }
 0x297   : > { %v1141_v43 = vrot.slane %v1134_v33, %v2869_v52  ;;  %v1159_v45 = vcombine.low %v1108_v32, %v1124_v36  ;;  %v1158_v51 = vrot.slane %v1151_v37, %v2869_v52 }
 0x298   : > { %v889_v46 = vcombine.high %v881_v38, %v2692_v2  ;;  %v907_v47 = vcombine.low %v898_v40, %v906_v42  ;;  %v908_v48 = vcombine.high %v898_v40, %v906_v42  ;;  %v890_v49 = vcombine.high %v888_v41, %v2692_v2 }
 0x299   : > { %v1142_v50 = vcombine.low %v1133_v44, %v1141_v43  ;;  %v1166_v53 = vrot.slane %v1159_v45, %v2869_v52  ;;  %v929_v54 = vshrl.u32 %v881_v38, 16  ;;  %v945_v59 = vshrl.u32 %v888_v41, 16 }
 0x29a   : > { %v915_v55 = vrot.slane %v907_v47, %v2872_v56  ;;  %v922_v57 = vrot.slane %v908_v48, %v2872_v56  ;;  %v937_v58 = vshrl.u32 %v889_v46, 16  ;;  %v953_v4 = vshrl.u32 %v890_v49, 16 }
 0x29b   : > { %v1149_v60 = vrot.slane %v1142_v50, %v2872_v56  ;;  %v1167_v61 = vcombine.low %v1158_v51, %v1166_v53 }
 0x29c   : > { %v923_v62 = vcombine.high %v915_v55, %v2692_v2  ;;  %v924_v63 = vcombine.high %v922_v57, %v2692_v2  ;;  %v927_v1 = vpack.i.b16 %v915_v55, %v881_v38  ;;  %v930_v3 = vshrl.u32 %v915_v55, 16  ;;  %v1357_v55 = vld [vmem:[%s588_s17] sm:$0xff] }
 0x29d   : > { %v943_v5 = vpack.i.b16 %v922_v57, %v888_v41  ;;  %v946_v6 = vshrl.u32 %v922_v57, 16  ;;  %v1174_v7 = vrot.slane %v1167_v61, %v2872_v56  ;;  %v1179_v19 = vshrl.u32 %v1149_v60, 16 }
 0x29e   : > { %v931_v8 = vpack.i.b16 %v930_v3, %v929_v54  ;;  %v935_v10 = vpack.i.b16 %v923_v62, %v889_v46  ;;  %v938_v11 = vshrl.u32 %v923_v62, 16  ;;  %v951_v12 = vpack.i.b16 %v924_v63, %v890_v49 }
 0x29f   : > { %v947_v13 = vpack.i.b16 %v946_v6, %v945_v59  ;;  %v954_v14 = vshrl.u32 %v924_v63, 16  ;;  %v957_v15 = vcombine.low %v927_v1, %v943_v5  ;;  %v1178_v16 = vpack.i.b16 %v1174_v7, %v1149_v60 }
 0x2a0   : > { %v939_v17 = vpack.i.b16 %v938_v11, %v937_v58  ;;  %v965_v18 = vcombine.low %v935_v10, %v951_v12  ;;  %v1180_v20 = vshrl.u32 %v1174_v7, 16  ;;  %v1175_v28 = vcombine.high %v1174_v7, %v2692_v2  ;;  %v1358_v58 = vld [vmem:[%s588_s17 + $0x8] sm:$0xff]  ;;  %v1359_v7 = vld [vmem:[%s588_s17 + $0x10] sm:$0xff]  ;;  %v1360_v11 = vld [vmem:[%s588_s17 + $0x18] sm:$0xff]  ;;  %s2693_s17 = smov 16  }
 0x2a1   : > { %v955_v21 = vpack.i.b16 %v954_v14, %v953_v4  ;;  %v982_v22 = vcombine.low %v931_v8, %v947_v13  ;;  %v1366_v23 = vsel %vm1361_vm3, %v1178_v16, 0  ;;  %v964_v24 = vrot.slane %v957_v15, %v2869_v52 }
 0x2a2   : > { %v972_v25 = vrot.slane %v965_v18, %v2869_v52  ;;  %2515 = vmatpush3.bf16.xpose.msra.mxu1 %v1366_v23  ;;  %v1181_v26 = vpack.i.b16 %v1180_v20, %v1179_v19  ;;  %v1150_v33 = vcombine.high %v1149_v60, %v2692_v2  ;;  %v1186_v36 = vshrl.u32 %v1175_v28, 16  ;;  %v2420_v23 = vld [vmem:[%s3105_s5 + $0x2] ss:$0 sm:$0xff] }
 0x2a3   : > { %v990_v27 = vcombine.low %v939_v17, %v955_v21  ;;  %2526 = vmatprep.subr.bf16.mxu1 %v2685_v9  ;;  %v989_v31 = vrot.slane %v982_v22, %v2869_v52 }
 0x2a4   : > { %v973_v29 = vcombine.low %v964_v24, %v972_v25  ;;  %v1412_v30 = vsel %vm1361_vm3, %v1181_v26, 0  ;;  %v1184_v38 = vpack.i.b16 %v1175_v28, %v1150_v33  ;;  %v1185_v40 = vshrl.u32 %v1150_v33, 16 }
 0x2a5   : > { %v997_v32 = vrot.slane %v990_v27, %v2869_v52  ;;  %2521 = vmatpush3.bf16.xpose.msra.mxu0 %v1412_v30  ;;  %v845_v24 = vadd.f32 %v2420_v23, %v2863_v39 }
 0x2a6   : > { %2532 = vmatprep.subr.bf16.mxu0 %v2685_v9  ;;  %v980_v35 = vrot.slane %v973_v29, %v2872_v56  ;;  %v1187_v44 = vpack.i.b16 %v1186_v36, %v1185_v40  ;;  %v1458_v45 = vsel %vm1361_vm3, %v1184_v38, 0 }
 0x2a7   : > { %v998_v34 = vcombine.low %v989_v31, %v997_v32  ;;  %v1188_v25 = vpack.c.bf16 %v845_v24, %v845_v24 }
 0x2a8   : > { %v1010_v42 = vshrl.u32 %v980_v35, 16  ;;  %v1504_v48 = vsel %vm1361_vm3, %v1187_v44, 0  ;;  %v981_v49 = vcombine.high %v980_v35, %v2692_v2 }
 0x2a9   : > { %v1005_v37 = vrot.slane %v998_v34, %v2872_v56 }
 0x2aa   : > { %v1016_v53 = vshrl.u32 %v981_v49, 16 }
 0x2ab   : > { %v1009_v41 = vpack.i.b16 %v1005_v37, %v980_v35  ;;  %v1011_v43 = vshrl.u32 %v1005_v37, 16  ;;  %v1006_v47 = vcombine.high %v1005_v37, %v2692_v2 }
 0x2ad   : > { %2517 = vmatmul.mubr.msk.bf16.vlgmr.msra.gmra.mxu1 %vm1361_vm3, %v1009_v41  ;;  %v1012_v46 = vpack.i.b16 %v1011_v43, %v1010_v42  ;;  %v1017_v50 = vshrl.u32 %v1006_v47, 16  ;;  %v1015_v51 = vpack.i.b16 %v1006_v47, %v981_v49 }
 0x2ae   : > { %2527 = vmatpush3.bf16.xpose.msra.mxu1 %v1458_v45  ;;  %2528 = vmatprep.mubr.msk.bf16.mxu1 %vm2686_vm1, %v2685_v9 }
 0x2af   : > { %2523 = vmatmul.mubr.msk.bf16.vlgmr.msra.gmra.mxu0 %vm1361_vm3, %v1012_v46  ;;  %2538 = vmatprep.subr.bf16.mxu1 %v2685_v9  ;;  %v1018_v54 = vpack.i.b16 %v1017_v50, %v1016_v53 }
 0x2b0   : > { %2533 = vmatpush3.bf16.xpose.msra.mxu0 %v1504_v48  ;;  %2534 = vmatprep.mubr.msk.bf16.mxu0 %vm2686_vm1, %v2685_v9 }
 0x2b1   : > { %2544 = vmatprep.subr.bf16.mxu0 %v2685_v9 }
 0x2b5   : > { %2529 = vmatmul.mubr.msk.bf16.vlgmr.msra.gmra.mxu1 %vm1361_vm3, %v1015_v51 }
 0x2b6   : > { %2540 = vmatprep.mubr.msk.bf16.mxu1 %vm2686_vm1, %v2685_v9 }
 0x2b7   : > { %2535 = vmatmul.mubr.msk.bf16.vlgmr.msra.gmra.mxu0 %vm1361_vm3, %v1018_v54  ;;  %v1202_v54 = vrot.slane %v1188_v25, %v2869_v52 }
 0x2b8   : > { %2546 = vmatprep.mubr.msk.bf16.mxu0 %vm2686_vm1, %v2685_v9 }
 0x36d   : > { %v1402_v57 = vpop.f32.mrf.mxu1 }
 0x36e   : > { %v1403_v59 = vadd.f32 %v1402_v57, %v1357_v55 }
 0x36f   : > { %v2518_v60 = vpop.f32.mrf.mxu1  ;;  %v1448_v61 = vpop.f32.mrf.mxu0 }
 0x370   : > { %1546 = vst.msk [vmem:[%s616_s25] sm:$0xff] %vm1361_vm3, %v1403_v59  ;;  %v1449_v62 = vadd.f32 %v1448_v61, %v1358_v58  ;;  %v1550_v63 = vsel %vm1361_vm3, %v1403_v59, -inf }
 0x371   : > { %1551 = vmax.xlane.f32.xlu1 %v1550_v63  ;;  %v1405_v1 = vpop.f32.mrf.mxu1  ;;  %v2524_v3 = vpop.f32.mrf.mxu0 }
 0x372   : > { %1547 = vst.msk [vmem:[%s616_s25 + $0x8] sm:$0xff] %vm1361_vm3, %v1449_v62  ;;  %v1553_v4 = vsel %vm1361_vm3, %v1449_v62, -inf }
 0x373   : > { %v2519_v5 = vpop.f32.mrf.mxu1  ;;  %1554 = vmax.xlane.f32.xlu0 %v1553_v4  ;;  %v1451_v6 = vpop.f32.mrf.mxu0 }
 0x375   : > { %v2525_v8 = vpop.f32.mrf.mxu0  ;;  %v1494_v10 = vpop.f32.mrf.mxu1 }
 0x376   : > { %v1495_v12 = vadd.f32 %v1494_v10, %v1359_v7 }
 0x377   : > { %v2530_v13 = vpop.f32.mrf.mxu1  ;;  %v1540_v14 = vpop.f32.mrf.mxu0 }
 0x378   : > { %1548 = vst.msk [vmem:[%s616_s25 + $0x10] sm:$0xff] %vm1361_vm3, %v1495_v12  ;;  %v1541_v15 = vadd.f32 %v1540_v14, %v1360_v11  ;;  %v1556_v16 = vsel %vm1361_vm3, %v1495_v12, -inf }
 0x379   : > { %1557 = vmax.xlane.f32.xlu1 %v1556_v16  ;;  %v1497_v17 = vpop.f32.mrf.mxu1  ;;  %v2536_v18 = vpop.f32.mrf.mxu0 }
 0x37a   : > { %1549 = vst.msk [vmem:[%s616_s25 + $0x18] sm:$0xff] %vm1361_vm3, %v1541_v15  ;;  %v1559_v21 = vsel %vm1361_vm3, %v1541_v15, -inf }
 0x37b   : > { %v2531_v19 = vpop.f32.mrf.mxu1  ;;  %v1543_v20 = vpop.f32.mrf.mxu0 }
 0x37d   : > { %1560 = vmax.xlane.f32.xlu1 %v1559_v21  ;;  %v2537_v22 = vpop.f32.mrf.mxu0 }
 0x38e   : > { %1192 = vrot.lane.b32.xlu1 %v1188_v25, %s2689_s28 }
 0x3fa   : > { %v1552_v26 = vpop.xlane.xlu1 %1551 }
 0x3fb   : > { %v1562_v27 = vmax.f32 %v1552_v26, -1e+30 }
 0x3fc   : > { %v1555_v28 = vpop.xlane.xlu0 %1554 }
 0x3fd   : > { %v1566_v29 = vsub.f32 %v1403_v59, %v1562_v27  ;;  %v1563_v30 = vmax.f32 %v1555_v28, -1e+30 }
 0x3ff   : > { %v1570_v31 = vmul.f32 1.442695, %v1566_v29  ;;  %v1567_v32 = vsub.f32 %v1449_v62, %v1563_v30 }
 0x401   : > { %2641 = vpow2.f32 %v1570_v31  ;;  %v1572_v33 = vmul.f32 1.442695, %v1567_v32 }
 0x402   : > { %v1558_v37 = vpop.xlane.xlu1 %1557 }
 0x403   : > { %2643 = vpow2.f32 %v1572_v33  ;;  %v1564_v38 = vmax.f32 %v1558_v37, -1e+30 }
 0x405   : > { %v1568_v42 = vsub.f32 %v1495_v12, %v1564_v38 }
 0x406   : > { %v1561_v40 = vpop.xlane.xlu1 %1560 }
 0x407   : > { %v1565_v41 = vmax.f32 %v1561_v40, -1e+30  ;;  %v1574_v44 = vmul.f32 1.442695, %v1568_v42 }
 0x409   : > { %v1569_v43 = vsub.f32 %v1541_v15, %v1565_v41  ;;  %2645 = vpow2.f32 %v1574_v44 }
 0x40a   : > { %v1193_v50 = vpop.permute.xlu1 %1192 }
 0x40b   : > { %v1576_v45 = vmul.f32 1.442695, %v1569_v43  ;;  %v1210_v51 = vrot.slane %v1193_v50, %v2869_v52 }
 0x40d   : > { %2647 = vpow2.f32 %v1576_v45  ;;  %v1211_v55 = vcombine.low %v1202_v54, %v1210_v51  ;;  %v1212_v58 = vcombine.high %v1202_v54, %v1210_v51 }
 0x40e   : > { %v2953_v34 = vpop.eup %2641 }
 0x40f   : > { %v1578_v35 = vsel %vm1361_vm3, %v2953_v34, 0.0  ;;  %v1219_v60 = vrot.slane %v1211_v55, %v2872_v56  ;;  %v1226_v1 = vrot.slane %v1212_v58, %v2872_v56 }
 0x410   : > { %v2957_v36 = vpop.eup %2643  ;;  %1579 = vadd.xlane.f32.xlu0 %v1578_v35 }
 0x411   : > { %v1581_v39 = vsel %vm1361_vm3, %v2957_v36, 0.0  ;;  %v1227_v7 = vcombine.high %v1219_v60, %v2692_v2  ;;  %v1228_v11 = vcombine.high %v1226_v1, %v2692_v2  ;;  %v1267_v12 = vshrl.u32 %v1219_v60, 16 }
 0x412   : > { %1582 = vadd.xlane.f32.xlu1 %v1581_v39  ;;  %v1283_v18 = vshrl.u32 %v1226_v1, 16 }
 0x413   : > { %v1275_v17 = vshrl.u32 %v1227_v7, 16 }
 0x416   : > { %v2963_v46 = vpop.eup %2645 }
 0x417   : > { %v1584_v48 = vsel %vm1361_vm3, %v2963_v46, 0.0 }
 0x41a   : > { %v2965_v47 = vpop.eup %2647 }
 0x41b   : > { %v1587_v49 = vsel %vm1361_vm3, %v2965_v47, 0.0 }
 0x423   : > { %1194 = vrot.lane.b32.xlu1 %v1188_v25, %s2687_s26 }
 0x426   : > { %1190 = vrot.lane.b32.xlu0 %v1188_v25, %s2688_s27  ;;  %v1291_v25 = vshrl.u32 %v1228_v11, 16  ;;  %s607_s27 = scalar_lea.vmem %s3114_s14, %s2396_s22 }
 0x445   : > { %1585 = vadd.xlane.f32.xlu0 %v1584_v48 }
 0x447   : > { %1588 = vadd.xlane.f32.xlu1 %v1587_v49 }
 0x499   : > { %v1580_v53 = vpop.xlane.xlu0 %1579 }
 0x49a   : > { %vm1590_vm4 = vcmp.gt.f32.partialorder %v1580_v53, 0.0 }
 0x49b   : > { %v1583_v57 = vpop.xlane.xlu1 %1582  ;;  %v1594_v3 = vsel %vm1590_vm4, %v1580_v53, 1.0 }
 0x49c   : > { %vm1591_vm5 = vcmp.gt.f32.partialorder %v1583_v57, 0.0  ;;  %2649 = vrcp.f32 %v1594_v3 }
 0x49d   : > { %v1191_v59 = vpop.permute.xlu0 %1190  ;;  %v1595_v4 = vsel %vm1591_vm5, %v1583_v57, 1.0 }
 0x49e   : > { %v1236_v62 = vrot.slane %v1191_v59, %v2869_v52  ;;  %2651 = vrcp.f32 %v1595_v4 }
 0x49f   : > { %v1195_v61 = vpop.permute.xlu1 %1194 }
 0x4a0   : > { %v1244_v63 = vrot.slane %v1195_v61, %v2869_v52 }
 0x4a2   : > { %v1245_v5 = vcombine.low %v1236_v62, %v1244_v63  ;;  %v1246_v6 = vcombine.high %v1236_v62, %v1244_v63 }
 0x4a4   : > { %v1253_v8 = vrot.slane %v1245_v5, %v2872_v56  ;;  %v1260_v10 = vrot.slane %v1246_v6, %v2872_v56 }
 0x4a6   : > { %v1261_v13 = vcombine.high %v1253_v8, %v2692_v2  ;;  %v1262_v14 = vcombine.high %v1260_v10, %v2692_v2  ;;  %v1265_v15 = vpack.i.b16 %v1253_v8, %v1219_v60  ;;  %v1268_v16 = vshrl.u32 %v1253_v8, 16 }
 0x4a7   : > { %v1281_v19 = vpack.i.b16 %v1260_v10, %v1226_v1  ;;  %v1284_v20 = vshrl.u32 %v1260_v10, 16 }
 0x4a8   : > { %v1269_v21 = vpack.i.b16 %v1268_v16, %v1267_v12  ;;  %v1273_v22 = vpack.i.b16 %v1261_v13, %v1227_v7  ;;  %v1276_v23 = vshrl.u32 %v1261_v13, 16  ;;  %v1289_v24 = vpack.i.b16 %v1262_v14, %v1228_v11 }
 0x4a9   : > { %v1285_v26 = vpack.i.b16 %v1284_v20, %v1283_v18  ;;  %v1292_v27 = vshrl.u32 %v1262_v14, 16  ;;  %v1295_v28 = vcombine.low %v1265_v15, %v1281_v19  ;;  %v2650_v42 = vpop.eup %2649  ;;  %v2631_v14 = vld [vmem:[%s3106_s6 + $0x8] sm:$0xff]  }
 0x4aa   : > { %v1277_v29 = vpack.i.b16 %v1276_v23, %v1275_v17  ;;  %v1303_v30 = vcombine.low %v1273_v22, %v1289_v24  ;;  %v1602_v49 = vmul.f32 %v2650_v42, %v2953_v34 }
 0x4ab   : > { %v1293_v31 = vpack.i.b16 %v1292_v27, %v1291_v25  ;;  %v1320_v32 = vcombine.low %v1269_v21, %v1285_v26  ;;  %v1302_v33 = vrot.slane %v1295_v28, %v2869_v52  ;;  %v2652_v44 = vpop.eup %2651 }
 0x4ac   : > { %v1310_v35 = vrot.slane %v1303_v30, %v2869_v52  ;;  %v1603_v55 = vmul.f32 %v2652_v44, %v2957_v36  ;;  %v1606_v63 = vpack.c.bf16 %v1602_v49, %v1602_v49 }
 0x4ad   : > { %v1328_v39 = vcombine.low %v1277_v29, %v1293_v31  ;;  %v1327_v38 = vrot.slane %v1320_v32, %v2869_v52 }
 0x4ae   : > { %v1311_v37 = vcombine.low %v1302_v33, %v1310_v35  ;;  %v1607_v1 = vpack.c.bf16 %v1603_v55, %v1603_v55 }
 0x4af   : > { %v1335_v40 = vrot.slane %v1328_v39, %v2869_v52 }
 0x4b0   : > { %v1318_v41 = vrot.slane %v1311_v37, %v2872_v56 }
 0x4b1   : > { %v1336_v43 = vcombine.low %v1327_v38, %v1335_v40 }
 0x4b2   : > { %v1319_v45 = vcombine.high %v1318_v41, %v2692_v2  ;;  %v1348_v51 = vshrl.u32 %v1318_v41, 16 }
 0x4b3   : > { %v1343_v48 = vrot.slane %v1336_v43, %v2872_v56  ;;  %v2632_v43 = vld [vmem:[%s3106_s6] sm:$0xff]  }
 0x4b4   : > { %v1354_v57 = vshrl.u32 %v1319_v45, 16 }
 0x4b5   : > { %v1347_v50 = vpack.i.b16 %v1343_v48, %v1318_v41  ;;  %v1349_v53 = vshrl.u32 %v1343_v48, 16  ;;  %v1344_v54 = vcombine.high %v1343_v48, %v2692_v2 }
 0x4b7   : > { %v1615_v58 = vsel %vm1613_vm6, %v1347_v50, 0  ;;  %v1350_v59 = vpack.i.b16 %v1349_v53, %v1348_v51  ;;  %v1353_v60 = vpack.i.b16 %v1344_v54, %v1319_v45  ;;  %v1355_v61 = vshrl.u32 %v1344_v54, 16 }
 0x4b8   : > { %2539 = vmatpush3.bf16.msra.mxu1 %v1615_v58 }
 0x4b9   : > { %v1661_v62 = vsel %vm1613_vm6, %v1350_v59, 0  ;;  %2550 = vmatprep.subr.bf16.mxu1 %v2685_v9  ;;  %v1356_v34 = vpack.i.b16 %v1355_v61, %v1354_v57  ;;  %v1707_v2 = vsel %vm1613_vm6, %v1353_v60, 0 }
 0x4ba   : > { %2545 = vmatpush3.bf16.msra.mxu0 %v1661_v62 }
 0x4bb   : > { %2541 = vmatmul.mubr.msk.bf16.vlgmr.msra.gmra.mxu1 %vm1361_vm3, %v1606_v63  ;;  %2556 = vmatprep.subr.bf16.mxu0 %v2685_v9  ;;  %v1753_v36 = vsel %vm1613_vm6, %v1356_v34, 0 }
 0x4bc   : > { %2551 = vmatpush3.bf16.msra.mxu1 %v1707_v2  ;;  %2552 = vmatprep.mubr.msk.bf16.mxu1 %vm2686_vm1, %v2685_v9 }
 0x4bd   : > { %2547 = vmatmul.mubr.msk.bf16.vlgmr.msra.gmra.mxu0 %vm1361_vm3, %v1607_v1  ;;  %2562 = vmatprep.subr.bf16.mxu1 %v2685_v9 }
 0x4be   : > { %2557 = vmatpush3.bf16.msra.mxu0 %v1753_v36  ;;  %2558 = vmatprep.mubr.msk.bf16.mxu0 %vm2686_vm1, %v2685_v9 }
 0x4bf   : > { %2570 = vmatprep.subr.bf16.mxu0 %v2685_v9 }
 0x4ce   : > { %v1586_v3 = vpop.xlane.xlu0 %1585 }
 0x4cf   : > { %vm1592_vm7 = vcmp.gt.f32.partialorder %v1586_v3, 0.0 }
 0x4d0   : > { %v1596_v4 = vsel %vm1592_vm7, %v1586_v3, 1.0  ;;  %v1589_v5 = vpop.xlane.xlu1 %1588 }
 0x4d1   : > { %2653 = vrcp.f32 %v1596_v4  ;;  %vm1593_vm8 = vcmp.gt.f32.partialorder %v1589_v5, 0.0 }
 0x4d2   : > { %v1597_v6 = vsel %vm1593_vm8, %v1589_v5, 1.0 }
 0x4d3   : > { %2655 = vrcp.f32 %v1597_v6 }
 0x4de   : > { %v2654_v7 = vpop.eup %2653 }
 0x4df   : > { %v1604_v8 = vmul.f32 %v2654_v7, %v2963_v46 }
 0x4e0   : > { %v2656_v10 = vpop.eup %2655 }
 0x4e1   : > { %v1608_v11 = vpack.c.bf16 %v1604_v8, %v1604_v8  ;;  %v1605_v12 = vmul.f32 %v2656_v10, %v2965_v47 }
 0x4e3   : > { %2553 = vmatmul.mubr.msk.bf16.vlgmr.msra.gmra.mxu1 %vm1361_vm3, %v1608_v11  ;;  %v1609_v13 = vpack.c.bf16 %v1605_v12, %v1605_v12 }
 0x4e4   : > { %2566 = vmatprep.mubr.msk.bf16.mxu1 %vm2686_vm1, %v2685_v9  ;;  %2563 = vmatpush3.bf16.msra.mxu1 %v2631_v14 }
 0x4e5   : > { %2559 = vmatmul.mubr.msk.bf16.vlgmr.msra.gmra.mxu0 %vm1361_vm3, %v1609_v13  ;;  %2564 = vmatprep.subr.bf16.mxu1 %v2685_v9  ;;  %v1948_v13 = vld [vmem:[#allocation3] sm:$0xff] }
 0x4e6   : > { %2574 = vmatprep.mubr.msk.bf16.mxu0 %vm2686_vm1, %v2685_v9 }
 0x4e8   : > { %2565 = vmatpush3.bf16.msra.mxu1 %v2632_v43  ;;  %v2638_v43 = vld [vmem:[%s3112_s12] sm:$0xff]  }
 0x4e9   : > { %2578 = vmatprep.subr.bf16.mxu1 %v2685_v9 }
 0x57b   : > { %v1651_v46 = vpop.f32.mrf.mxu1 }
 0x57d   : > { %v2542_v47 = vpop.f32.mrf.mxu1  ;;  %v1697_v15 = vpop.f32.mrf.mxu0 }
 0x57f   : > { %v1654_v16 = vpop.f32.mrf.mxu1  ;;  %v2548_v17 = vpop.f32.mrf.mxu0 }
 0x581   : > { %v2543_v18 = vpop.f32.mrf.mxu1  ;;  %v1700_v19 = vpop.f32.mrf.mxu0 }
 0x582   : > { %v2437_v18 = vld [vmem:[%s3107_s7] ss:$0 sm:$0xff] }
 0x583   : > { %v2549_v20 = vpop.f32.mrf.mxu0 }
 0x5a3   : > { %v1743_v21 = vpop.f32.mrf.mxu1 }
 0x5a4   : > { %v1795_v22 = vcombine.low %v1651_v46, %v1743_v21  ;;  %v1796_v23 = vcombine.high %v1651_v46, %v1743_v21 }
 0x5a5   : > { %v2554_v24 = vpop.f32.mrf.mxu1  ;;  %v1789_v25 = vpop.f32.mrf.mxu0 }
 0x5a6   : > { %v1811_v26 = vcombine.low %v1697_v15, %v1789_v25  ;;  %v1812_v27 = vcombine.high %v1697_v15, %v1789_v25  ;;  %v1803_v30 = vrot.slane %v1795_v22, %v2869_v52  ;;  %v1810_v31 = vrot.slane %v1796_v23, %v2869_v52 }
 0x5a7   : > { %v1746_v28 = vpop.f32.mrf.mxu1  ;;  %v2560_v29 = vpop.f32.mrf.mxu0 }
 0x5a8   : > { %v1819_v32 = vrot.slane %v1811_v26, %v2869_v52  ;;  %v1826_v33 = vrot.slane %v1812_v27, %v2869_v52  ;;  %v2633_v27 = vld [vmem:[%s3110_s10 + $0x8] sm:$0xff]  }
 0x5a9   : > { %v2555_v35 = vpop.f32.mrf.mxu1  ;;  %v1792_v39 = vpop.f32.mrf.mxu0  ;;  %2571 = vmatpush3.bf16.msra.mxu0 %v2633_v27 }
 0x5aa   : > { %v1827_v37 = vcombine.low %v1803_v30, %v1819_v32  ;;  %v1828_v38 = vcombine.high %v1803_v30, %v1819_v32  ;;  %v1843_v40 = vcombine.low %v1810_v31, %v1826_v33  ;;  %v1844_v41 = vcombine.high %v1810_v31, %v1826_v33  ;;  %2572 = vmatprep.subr.bf16.mxu0 %v2685_v9  ;;  %v2438_v32 = vld [vmem:[%s3108_s8] ss:$0 sm:$0xff] }
 0x5ab   : > { %v2561_v42 = vpop.f32.mrf.mxu0  ;;  %v2439_v35 = vld [vmem:[%s3109_s9] ss:$0 sm:$0xff] }
 0x5ac   : > { %v1835_v44 = vrot.slane %v1827_v37, %v2872_v56  ;;  %v1842_v45 = vrot.slane %v1828_v38, %v2872_v56  ;;  %v1851_v48 = vrot.slane %v1843_v40, %v2872_v56  ;;  %v1858_v49 = vrot.slane %v1844_v41, %v2872_v56  ;;  %v2635_v40 = vld [vmem:[%s3112_s12 + $0x18] sm:$0xff]   ;;  %v2636_v41 = vld [vmem:[%s3112_s12 + $0x10] sm:$0xff]   ;;  %v2637_v42 = vld [vmem:[%s3112_s12 + $0x8] sm:$0xff]  }
 0x5ae   : > { %v1863_v50 = vcombine.low %v1835_v44, %v1842_v45  ;;  %v2432_v51 = vcombine.high %v1835_v44, %v1842_v45  ;;  %v1879_v53 = vcombine.low %v1851_v48, %v1858_v49  ;;  %v2433_v54 = vcombine.high %v1851_v48, %v1858_v49  ;;  %v2440_v44 = vld [vmem:[%s3111_s11] ss:$0 sm:$0xff] }
 0x5b0   : > { %v1870_v55 = vrot.slane %v1863_v50, %v2869_v52  ;;  %v1878_v57 = vrot.slane %v2432_v51, %v2869_v52  ;;  %v1886_v58 = vrot.slane %v1879_v53, %v2869_v52  ;;  %v1894_v59 = vrot.slane %v2433_v54, %v2869_v52 }
 0x5b2   : > { %v1896_v60 = vcombine.high %v1870_v55, %v1878_v57  ;;  %v1912_v61 = vcombine.high %v1886_v58, %v1894_v59  ;;  %v1895_v62 = vcombine.low %v1870_v55, %v1878_v57  ;;  %v1911_v63 = vcombine.low %v1886_v58, %v1894_v59  ;;  %v2444_v59 = vld [vmem:[%s3113_s13] ss:$0 sm:$0xff] }
 0x5b4   : > { %v1910_v34 = vrot.slane %v1896_v60, %v2872_v56  ;;  %v1926_v2 = vrot.slane %v1912_v61, %v2872_v56  ;;  %v1903_v1 = vrot.slane %v1895_v62, %v2872_v56  ;;  %v1919_v36 = vrot.slane %v1911_v63, %v2872_v56 }
 0x5b6   : > { %v1929_v3 = vcombine.low %v1910_v34, %v1926_v2  ;;  %v1928_v4 = vcombine.high %v1903_v1, %v1919_v36  ;;  %v1927_v5 = vcombine.low %v1903_v1, %v1919_v36  ;;  %v1930_v52 = vcombine.high %v1910_v34, %v1926_v2 }
 0x5b8   : > { %1936 = vrot.lane.b32.xlu1 %v1929_v3, %s2693_s17  ;;  %1932 = vrot.lane.b32.xlu0 %v1928_v4, %s2694_s23 }
 0x5bc   : > { %1940 = vrot.lane.b32.xlu0 %v1930_v52, %s2695_s24 }
 0x62a   : > { %v1933_v6 = vpop.permute.xlu0 %1932  ;;  %v1937_v7 = vpop.permute.xlu1 %1936 }
 0x62b   : > { %v1943_v8 = vsel %vm1361_vm3, %v1927_v5, %v1933_v6 }
 0x62c   : > { %v1945_v11 = vsel %vm1944_vm9, %v1943_v8, %v1937_v7 }
 0x62e   : > { %v1941_v10 = vpop.permute.xlu0 %1940 }
 0x62f   : > { %v1947_v12 = vsel %vm1946_vm10, %v1945_v11, %v1941_v10 }
 0x630   : > { %v1949_v56 = vpack.c.bf16 %v1947_v12, %v1947_v12 }
 0x632   : > { %2567 = vmatmul.mubr.msk.bf16.vlgmr.msra.gmra.mxu1 %vm624_vm0, %v1949_v56 }
 0x633   : > { %2586 = vmatprep.mubr.msk.bf16.mxu1 %vm2686_vm1, %v2685_v9  ;;  %2579 = vmatpush3.bf16.msra.mxu1 %v2635_v40 }
 0x634   : > { %2580 = vmatprep.subr.bf16.mxu1 %v2685_v9 }
 0x637   : > { %2581 = vmatpush3.bf16.msra.mxu1 %v2636_v41 }
 0x638   : > { %2582 = vmatprep.subr.bf16.mxu1 %v2685_v9 }
 0x63b   : > { %2583 = vmatpush3.bf16.msra.mxu1 %v2637_v42 }
 0x63c   : > { %2584 = vmatprep.subr.bf16.mxu1 %v2685_v9 }
 0x63f   : > { %2585 = vmatpush3.bf16.msra.mxu1 %v2638_v43 }
 0x6f2   : > { %v2003_v14 = vpop.f32.mrf.mxu1 }
 0x6f3   : > { %v2009_v46 = vadd.f32 %v2003_v14, %v1948_v13 }
 0x6f4   : > { %v2568_v47 = vpop.f32.mrf.mxu1 }
 0x6f5   : > { %2010 = vst.msk [vmem:[#allocation3] sm:$0xff] %vm624_vm0, %v2009_v46 }
 0x6f6   : > { %v2006_v15 = vpop.f32.mrf.mxu1 }
 0x6f8   : > { %v2569_v16 = vpop.f32.mrf.mxu1 }
 0x6fc   : > { %v2015_v17 = vld [vmem:[#allocation3] sm:$0xff] }
 0x6fd   : > { %v2016_v19 = vadd.f32 %v2015_v17, %v2802_v0  ;;  %v2634_v0 = vld [vmem:[%s3110_s10] sm:$0xff]  }
 0x6fe   : > { %2573 = vmatpush3.bf16.msra.mxu0 %v2634_v0 }
 0x6ff   : > { %v2024_v20 = vadd.f32 %v2437_v18, %v2016_v19 }
 0x701   : > { %v2025_v21 = vsel %vm624_vm0, %v2024_v20, 0.0 }
 0x702   : > { %2026 = vadd.xlane.f32.xlu1 %v2025_v21 }
 0x78b   : > { %v2027_v22 = vpop.xlane.xlu1 %2026 }
 0x78c   : > { %v2029_v23 = vmul.f32 0.03125, %v2027_v22 }
 0x78e   : > { %v2030_v24 = vsub.f32 %v2024_v20, %v2029_v23 }
 0x790   : > { %v2031_v25 = vmul.f32 %v2030_v24, %v2030_v24 }
 0x792   : > { %v2032_v26 = vsel %vm624_vm0, %v2031_v25, 0.0 }
 0x793   : > { %2033 = vadd.xlane.f32.xlu0 %v2032_v26 }
 0x81c   : > { %v2034_v28 = vpop.xlane.xlu0 %2033 }
 0x81d   : > { %v2035_v29 = vmul.f32 0.03125, %v2034_v28 }
 0x81f   : > { %v2036_v30 = vadd.f32 1e-05, %v2035_v29 }
 0x821   : > { %2657 = vrsqrt.f32 %v2036_v30 }
 0x82e   : > { %v2658_v31 = vpop.eup %2657 }
 0x82f   : > { %v2038_v33 = vmul.f32 %v2658_v31, %v2030_v24 }
 0x831   : > { %v2046_v39 = vmul.f32 %v2438_v32, %v2038_v33 }
 0x833   : > { %v2054_v37 = vadd.f32 %v2439_v35, %v2046_v39 }
 0x835   : > { %v2055_v38 = vpack.c.bf16 %v2054_v37, %v2054_v37 }
 0x837   : > { %2575 = vmatmul.mubr.msk.bf16.vlgmr.msra.gmra.mxu0 %vm624_vm0, %v2055_v38 }
 0x8f7   : > { %v2116_v45 = vpop.f32.mrf.mxu0 }
 0x8f8   : > { %v2117_v48 = vadd.f32 %v2440_v44, %v2116_v45 }
 0x8f9   : > { %v2576_v49 = vpop.f32.mrf.mxu0 }
 0x8fa   : > { %v2123_v50 = vmul.f32 0.70710677, %v2117_v48  ;;  %v2122_v55 = vmul.f32 0.5, %v2117_v48 }
 0x8fb   : > { %v2119_v51 = vpop.f32.mrf.mxu0 }
 0x8fc   : > { %2659 = verf.f32 %v2123_v50 }
 0x8fd   : > { %v2577_v53 = vpop.f32.mrf.mxu0 }
 0x909   : > { %v2660_v54 = vpop.eup %2659 }
 0x90a   : > { %v2125_v9 = vadd.f32 1.0, %v2660_v54 }
 0x90c   : > { %v2126_v57 = vmul.f32 %v2125_v9, %v2122_v55 }
 0x90e   : > { %v2127_v58 = vpack.c.bf16 %v2126_v57, %v2126_v57 }
 0x910   : > { %2587 = vmatmul.mubr.msk.bf16.vlgmr.msra.gmra.mxu1 %vm2167_vm11, %v2127_v58 }
 0x9d0   : > { %v2205_v60 = vpop.f32.mrf.mxu1 }
 0x9d1   : > { %v2206_v61 = vadd.f32 %v2444_v59, %v2205_v60 }
 0x9d2   : > { %v2588_v62 = vpop.f32.mrf.mxu1 }
 0x9d3   : > { %v2211_v63 = vadd.f32 %v2206_v61, %v2024_v20 }
 0x9d4   : > { %v2208_v34 = vpop.f32.mrf.mxu1 }
 0x9d5   : > { %2212 = vst.msk [vmem:[%s607_s27] sm:$0xff] %vm624_vm0, %v2211_v63 }
 0x9d6   : > { %v2589_v2 = vpop.f32.mrf.mxu1 }
 0x9d7 PF: > { %s26_s20 = sadd.s32 1, %s2683_s20   ;;  %s3116_s18 = smov %s2679_s19 }
 0x9d8   : > { %p23_p5 = scmp.ge.s32.totalorder %s26_s20, 4   ;;  %s3117_s19 = smov %s3119_s21 }
 0x9da   :  { %25 = sbr.rel (!%p23_p5) target bundleno = 2 (0x2), region = 140 }

</bundles_post_ra>
